<compile_context>
chip_gen: v6e
topology: v6e:2x2x1
jax: 0.10.0
libtpu: 0.0.40
codegen_flags: <defaults>
</compile_context>

<pallas_src>
import functools

import jax
import jax.numpy as jnp
import numpy as np
from jax.experimental import pallas as pl
from jax.experimental.pallas import tpu as pltpu

HIGH = jax.lax.Precision.HIGHEST   # reference only


# ----------------------------------------------------------------------------
# Pallas kernel: one (batch element, time tile) per grid step.
# ----------------------------------------------------------------------------
def _fae_decoder_kernel(
    xe_ref, temb_ref, np_ref, cond_ref,                       # per-tile inputs
    w_pre_ref, w_gate_ref, b_gate_ref, w_rs_ref, b_rs_ref,    # weights (shared)
    w_skip_ref, b_skip_ref, w_out_ref, b_out_ref,
    o_ref,
    *, H, K, ksize, n_layers, TT, HALO):
    TL = xe_ref.shape[2]            # tile rows including halo
    pad = (ksize - 1) // 2
    tile = pl.program_id(1)

    xe = xe_ref[0, 0]               # (TL, c_latent) bf16, latent repeated K x in time
    nonpad = np_ref[0, 0]           # (TL, 1) f32
    temb = temb_ref[0]              # (1, H) f32   (pre_net bias already folded in)
    cond = cond_ref[0, 0]           # (TL, c_cond) bf16

    r_idx = jax.lax.broadcasted_iota(jnp.int32, (TL, 1), 0)
    # phase of the *global* time index (window starts at tile*TT - HALO); the
    # static offset keeps the mod argument non-negative.
    phase = (tile * TT + r_idx + ((-HALO) % K)) % K

    # --- pre_net: ConvTranspose1d(kernel=stride=K) as ONE bf16 matmul over a
    # phase-selected (TL, K*c_latent) operand (no post-matmul masking).
    zero = jnp.zeros_like(xe)
    xe_ph = jnp.concatenate(
        [jnp.where(phase == k, xe, zero) for k in range(K)], axis=1)
    h = jnp.dot(xe_ph, w_pre_ref[...], preferred_element_type=jnp.float32)
    h = (h + temb) * nonpad                                    # (TL, H) f32

    b_gate = b_gate_ref[...]        # (L, 2H) f32, sigmoid half pre-scaled by 0.5
    b_rs = b_rs_ref[...]            # (max(L-1,1), 2H) f32

    x = h                           # residual state (f32)
    output = jnp.zeros((TL, H), jnp.float32)

    # TODO(synk): for large n_layers switch to lax.fori_loop over the stacked
    # weight refs; full unroll is fine for the small L used here.
    for i in range(n_layers):
        # "same"-padded ksize conv + cond 1x1 fused into ONE matmul with
        # contraction ksize*H + c_cond.  Taps rolled in f32 (cheap XLU sublane
        # roll), cast per column to bf16 so no full-width f32 concat exists.
        cols = []
        for j in range(ksize):
            s = j - pad
            if s == 0:
                cols.append(x.astype(jnp.bfloat16))
            else:
                rolled = pltpu.roll(x, shift=(-s) % TL, axis=0)
                valid = ((r_idx + s) >= 0) & ((r_idx + s) < TL)
                cols.append(jnp.where(valid, rolled, 0.0).astype(jnp.bfloat16))
        cols.append(cond)
        xs = jnp.concatenate(cols, axis=1)          # (TL, ksize*H + c_cond) bf16

        a = jnp.dot(xs, w_gate_ref[i], preferred_element_type=jnp.float32)
        a = a + b_gate[i:i + 1]
        # ONE tanh over the full 2H gate; because the sigmoid half was
        # pre-scaled by 0.5, tanh(a1)*sigmoid(a2) == t[:H] * (0.5*t[H:] + 0.5).
        # TODO(synk): evaluate this elementwise block in bf16 on v6e/v7x.
        t = jnp.tanh(a)
        acts = (t[:, :H] * (0.5 * t[:, H:] + 0.5)).astype(jnp.bfloat16)

        if i < n_layers - 1:
            rs = jnp.dot(acts, w_rs_ref[i], preferred_element_type=jnp.float32)
            rs = rs + b_rs[i:i + 1]
            x = (x + rs[:, :H]) * nonpad
            output = output + rs[:, H:]
        else:
            # last layer has only a skip half: (H, H) matmul, no residual update
            sk = jnp.dot(acts, w_skip_ref[...], preferred_element_type=jnp.float32)
            output = output + sk + b_skip_ref[...]

    # single nonpadding application: the module applies the 0/1 mask twice,
    # which is idempotent for binary masks.  Only the central TT rows (halo
    # stripped) are projected and stored.
    out_rows = (output * nonpad)[HALO:HALO + TT]
    out = jnp.dot(out_rows.astype(jnp.bfloat16), w_out_ref[...],
                  preferred_element_type=jnp.float32) + b_out_ref[...]
    o_ref[0, 0] = out.astype(o_ref.dtype)


# ----------------------------------------------------------------------------
# Wrapper: PyTorch (NCW) interface, parameter/layout plumbing in plain JAX.
# ----------------------------------------------------------------------------
def _pick_t_tile(T, target=512):
    best = T
    for tt in range(8, min(T, target) + 1, 8):
        if T % tt == 0:
            best = tt
    return best


def fae_decoder_pallas(x, nonpadding, cond, temb, P, *, stride, kernel_size,
                       n_layers, t_tile=None):
    B, c_latent, T_in = x.shape
    K = stride
    T = T_in * K
    H = P['w_ct'].shape[1]
    c_cond = P['w_cond'].shape[1]
    out_ch = P['w_out'].shape[0]
    out_pad = max(128, ((out_ch + 127) // 128) * 128)   # lane-dense store width
    pad = (kernel_size - 1) // 2
    bf16 = jnp.bfloat16

    # ---- time tiling: TT rows per grid step, HALO >= n_layers*pad rows of
    # overlap per side (rounded to a sublane multiple) so the chained WN convs
    # are exact on the central TT rows of every tile.
    if t_tile is None:
        t_tile = _pick_t_tile(T)
    assert T % t_tile == 0, "t_tile must divide T"
    nt = T // t_tile
    halo = 0 if nt == 1 else ((n_layers * pad + 7) // 8) * 8
    TL = t_tile + 2 * halo

    # ---- kernel-layout weights (bf16 MXU operands, f32 biases) ----
    # pre_net: (c_latent, H, K) -> (K*c_latent, H); bias folded into temb.
    w_pre = jnp.transpose(P['w_ct'], (2, 0, 1)).reshape(K * c_latent, H).astype(bf16)
    temb_pb = (temb + P['b_ct'][None, :]).reshape(B, 1, H).astype(jnp.float32)

    # fused gate matmul [ksize taps of x | cond] -> 2H; sigmoid half (columns
    # H:2H) pre-scaled by 0.5 so one tanh evaluates tanh+sigmoid.
    w_in = jnp.stack(
        [jnp.transpose(w, (2, 1, 0)).reshape(kernel_size * H, 2 * H)
         for w in P['w_in']])                                          # (L, kH, 2H)
    w_cnd = jnp.transpose(
        P['w_cond'][:, :, 0].reshape(n_layers, 2 * H, c_cond), (0, 2, 1))  # (L, c_cond, 2H)
    w_gate = jnp.concatenate([w_in, w_cnd], axis=1)                    # (L, kH+c_cond, 2H)
    w_gate = w_gate.at[:, :, H:].multiply(0.5).astype(bf16)
    b_gate = jnp.stack(P['b_in']) + P['b_cond'].reshape(n_layers, 2 * H)
    b_gate = b_gate.at[:, H:].multiply(0.5).astype(jnp.float32)        # (L, 2H)

    # res/skip 1x1: layers 0..L-2 produce (H -> 2H); the last layer is handled
    # as a skip-only (H, H) matmul in the kernel (no zero-padded residual half).
    if n_layers > 1:
        w_rs = jnp.stack([jnp.transpose(P['w_rs'][i][:, :, 0], (1, 0))
                          for i in range(n_layers - 1)]).astype(bf16)      # (L-1, H, 2H)
        b_rs = jnp.stack([P['b_rs'][i]
                          for i in range(n_layers - 1)]).astype(jnp.float32)
    else:
        w_rs = jnp.zeros((1, H, 2 * H), bf16)          # dummy, never read
        b_rs = jnp.zeros((1, 2 * H), jnp.float32)
    w_skip = jnp.transpose(P['w_rs'][n_layers - 1][:, :, 0], (1, 0)).astype(bf16)
    b_skip = P['b_rs'][n_layers - 1][None, :].astype(jnp.float32)

    # out_proj 1x1, zero-padded to a lane-dense output width, bf16 store.
    w_out = jnp.zeros((H, out_pad), jnp.float32).at[:, :out_ch].set(
        jnp.transpose(P['w_out'][:, :, 0], (1, 0))).astype(bf16)
    b_out = jnp.zeros((1, out_pad), jnp.float32).at[:, :out_ch].set(
        P['b_out'][None, :])

    # ---- channel-last inputs + explicit halo windows: (B, nt, TL, C) ----
    xe = jnp.transpose(jnp.repeat(x, K, axis=2), (0, 2, 1)).astype(bf16)
    np_t = jnp.transpose(nonpadding, (0, 2, 1)).astype(jnp.float32)
    cond_t = jnp.transpose(cond, (0, 2, 1)).astype(bf16)

    def windows(a):                                  # (B, T, C) -> (B, nt, TL, C)
        if nt == 1 and halo == 0:
            return a[:, None]
        ap = jnp.pad(a, ((0, 0), (halo, halo), (0, 0)))
        idx = jnp.arange(nt)[:, None] * t_tile + jnp.arange(TL)[None, :]
        return ap[:, idx, :]

    xe_w, np_w, cond_w = windows(xe), windows(np_t), windows(cond_t)

    kernel = functools.partial(_fae_decoder_kernel, H=H, K=K, ksize=kernel_size,
                               n_layers=n_layers, TT=t_tile, HALO=halo)

    def win_spec(c):
        return pl.BlockSpec((1, 1, TL, c), lambda b, t: (b, t, 0, 0))

    def full_spec(a):
        nd = a.ndim
        return pl.BlockSpec(a.shape, lambda b, t, _nd=nd: (0,) * _nd)
    # NOTE: the stacked weights total <100 KiB here so default double buffering
    # of these constant-index specs costs nothing; for production-sized weights
    # switch them to pipeline_mode=pl.Buffered(1).
    # TODO(synk): for very small B*T, pack several (batch, tile) windows into
    # one grid step to enlarge M per matmul.

    out = pl.pallas_call(
        kernel,
        out_shape=jax.ShapeDtypeStruct((B, nt, t_tile, out_pad), bf16),
        grid_spec=pltpu.PrefetchScalarGridSpec(
            num_scalar_prefetch=0,
            grid=(B, nt),
            in_specs=[
                win_spec(c_latent),
                pl.BlockSpec((1, 1, H), lambda b, t: (b, 0, 0)),
                win_spec(1),
                win_spec(c_cond),
                full_spec(w_pre), full_spec(w_gate), full_spec(b_gate),
                full_spec(w_rs), full_spec(b_rs), full_spec(w_skip),
                full_spec(b_skip), full_spec(w_out), full_spec(b_out),
            ],
            out_specs=pl.BlockSpec((1, 1, t_tile, out_pad),
                                   lambda b, t: (b, t, 0, 0)),
        ),
        compiler_params=pltpu.CompilerParams(
            dimension_semantics=("parallel", "parallel"),
            # re-derive per TPU generation: v7x has only 64 MiB physical VMEM;
            # on v5e/v6e this can be raised (larger t_tile) toward ~100 MiB.
            vmem_limit_bytes=32 * 1024 * 1024),
    )(xe_w, temb_pb, np_w, cond_w,
      w_pre, w_gate, b_gate, w_rs, b_rs, w_skip, b_skip, w_out, b_out)

    # (B, nt, TT, out_pad) -> NCW f32, dropping lane padding.
    out = out.reshape(B, T, out_pad)[:, :, :out_ch]
    return jnp.transpose(out, (0, 2, 1)).astype(jnp.float32)


# ----------------------------------------------------------------------------
# Pure-JAX reference (mirrors the PyTorch module op-for-op) for validation.
# ----------------------------------------------------------------------------
def _conv1d_ref(x, w, b, padding):
    y = jax.lax.conv_general_dilated(
        x, w, window_strides=(1,), padding=[(padding, padding)],
        dimension_numbers=('NCH', 'OIH', 'NCH'), precision=HIGH)
    return y + b[None, :, None]


def fae_decoder_ref(x, nonpadding, cond, temb, P, *, stride, kernel_size,
                    n_layers):
    K = stride
    B, _, T_in = x.shape
    H = P['w_ct'].shape[1]
    pad = (kernel_size - 1) // 2
    y = jnp.einsum('bct,cok->botk', x, P['w_ct'], precision=HIGH)
    h = y.reshape(B, H, T_in * K) + P['b_ct'][None, :, None]
    h = h + temb[:, :, None]
    h = h * nonpadding
    condp = jnp.einsum('bct,oc->bot', cond, P['w_cond'][:, :, 0],
                       precision=HIGH) + P['b_cond'][None, :, None]
    x_cur = h
    output = jnp.zeros_like(h)
    for i in range(n_layers):
        xi = _conv1d_ref(x_cur, P['w_in'][i], P['b_in'][i], pad)
        a = xi + condp[:, i * 2 * H:(i + 1) * 2 * H, :]
        acts = jnp.tanh(a[:, :H]) * jax.nn.sigmoid(a[:, H:])
        rs = jnp.einsum('bct,oc->bot', acts, P['w_rs'][i][:, :, 0],
                        precision=HIGH) + P['b_rs'][i][None, :, None]
        if i < n_layers - 1:
            x_cur = (x_cur + rs[:, :H]) * nonpadding
            output = output + rs[:, H:]
        else:
            output = output + rs
    output = output * nonpadding          # WN
    output = output * nonpadding          # FAEDecoder
    return jnp.einsum('bct,oc->bot', output, P['w_out'][:, :, 0],
                      precision=HIGH) + P['b_out'][None, :, None]


# ----------------------------------------------------------------------------
# Deterministic parameter init (PyTorch weight layouts).
# ----------------------------------------------------------------------------
def init_params(key, c_latent, H, out_ch, ksize, n_layers, c_cond, K):
    ks = list(jax.random.split(key, 10 + 4 * n_layers))

    def rnd(shape, scale=0.1):
        return jax.random.normal(ks.pop(), shape, jnp.float32) * scale

    P = {}
    P['w_ct'] = rnd((c_latent, H, K))                      # ConvTranspose1d
    P['b_ct'] = rnd((H,))
    P['w_cond'] = rnd((2 * H * n_layers, c_cond, 1))       # WN cond 1x1
    P['b_cond'] = rnd((2 * H * n_layers,))
    P['w_in'] = [rnd((2 * H, H, ksize)) for _ in range(n_layers)]
    P['b_in'] = [rnd((2 * H,)) for _ in range(n_layers)]
    P['w_rs'], P['b_rs'] = [], []
    for i in range(n_layers):
        rsc = 2 * H if i < n_layers - 1 else H
        P['w_rs'].append(rnd((rsc, H, 1)))
        P['b_rs'].append(rnd((rsc,)))
    P['w_out'] = rnd((out_ch, H, 1))                       # out_proj 1x1
    P['b_out'] = rnd((out_ch,))
    return P


if __name__ == "__main__":
    B, c_latent, T_in = 2, 8, 8
    H, out_ch, ksize, n_layers, c_cond = 32, 8, 3, 2, 16
    K = 4                       # strides=[4]
    T = T_in * K

    key = jax.random.PRNGKey(0)
    k_in, k_param = jax.random.split(key)
    kx, kc, kt = jax.random.split(k_in, 3)

    x = jax.random.normal(kx, (B, c_latent, T_in), jnp.float32)
    cond = jax.random.normal(kc, (B, c_cond, T), jnp.float32)
    temb = jax.random.normal(kt, (B, H), jnp.float32)
    nonpadding = jnp.ones((B, 1, T), jnp.float32).at[1, :, T - 5:].set(0.0)

    P = init_params(k_param, c_latent, H, out_ch, ksize, n_layers, c_cond, K)

    ref = fae_decoder_ref(x, nonpadding, cond, temb, P,
                          stride=K, kernel_size=ksize, n_layers=n_layers)

    # exercise both the tiled-with-halo path (t_tile=16 -> 2 time tiles) and
    # the single-tile path (t_tile=None -> whole T per step)
    for tt in (16, None):
        out = fae_decoder_pallas(x, nonpadding, cond, temb, P, stride=K,
                                 kernel_size=ksize, n_layers=n_layers,
                                 t_tile=tt)
        out = jax.block_until_ready(out)
        assert out.shape == (B, out_ch, T)
        # bf16 MXU operands + bf16 output store -> loose tolerance vs fp32 ref
        np.testing.assert_allclose(np.asarray(out), np.asarray(ref),
                                   rtol=5e-2, atol=5e-2)
    print("KERNEL_OK")
</pallas_src>

<mosaic_0001>
module attributes {stable_mosaic.version = 11 : i64} {
  func.func @_fae_decoder_kernel(%arg0: i32, %arg1: i32, %arg2: memref<1x1x32x8xbf16, #tpu.memory_space<vmem>>, %arg3: memref<1x1x32xf32, #tpu.memory_space<vmem>>, %arg4: memref<1x1x32x1xf32, #tpu.memory_space<vmem>>, %arg5: memref<1x1x32x16xbf16, #tpu.memory_space<vmem>>, %arg6: memref<32x32xbf16, #tpu.memory_space<vmem>>, %arg7: memref<2x112x64xbf16, #tpu.memory_space<vmem>>, %arg8: memref<2x64xf32, #tpu.memory_space<vmem>>, %arg9: memref<1x32x64xbf16, #tpu.memory_space<vmem>>, %arg10: memref<1x64xf32, #tpu.memory_space<vmem>>, %arg11: memref<32x32xbf16, #tpu.memory_space<vmem>>, %arg12: memref<1x32xf32, #tpu.memory_space<vmem>>, %arg13: memref<32x128xbf16, #tpu.memory_space<vmem>>, %arg14: memref<1x128xf32, #tpu.memory_space<vmem>>, %arg15: memref<1x1x16x128xbf16, #tpu.memory_space<vmem>>) attributes {dimension_semantics = [#tpu.dimension_semantics<parallel>, #tpu.dimension_semantics<parallel>], iteration_bounds = array<i64: 2, 2>, scalar_prefetch = 0 : i64, scratch_operands = 0 : i64, tpu.core_type = #tpu.core_type<tc>, window_params = [{transform_indices = @transform_0, window_bounds = array<i64: 1, 1, 32, 8>}, {transform_indices = @transform_1, window_bounds = array<i64: 1, 1, 32>}, {transform_indices = @transform_2, window_bounds = array<i64: 1, 1, 32, 1>}, {transform_indices = @transform_3, window_bounds = array<i64: 1, 1, 32, 16>}, {pipeline_mode = #tpu.pipeline_mode<synchronous>, transform_indices = @transform_4, window_bounds = array<i64: 32, 32>}, {pipeline_mode = #tpu.pipeline_mode<synchronous>, transform_indices = @transform_5, window_bounds = array<i64: 2, 112, 64>}, {pipeline_mode = #tpu.pipeline_mode<synchronous>, transform_indices = @transform_6, window_bounds = array<i64: 2, 64>}, {pipeline_mode = #tpu.pipeline_mode<synchronous>, transform_indices = @transform_7, window_bounds = array<i64: 1, 32, 64>}, {pipeline_mode = #tpu.pipeline_mode<synchronous>, transform_indices = @transform_8, window_bounds = array<i64: 1, 64>}, {pipeline_mode = #tpu.pipeline_mode<synchronous>, transform_indices = @transform_9, window_bounds = array<i64: 32, 32>}, {pipeline_mode = #tpu.pipeline_mode<synchronous>, transform_indices = @transform_10, window_bounds = array<i64: 1, 32>}, {pipeline_mode = #tpu.pipeline_mode<synchronous>, transform_indices = @transform_11, window_bounds = array<i64: 32, 128>}, {pipeline_mode = #tpu.pipeline_mode<synchronous>, transform_indices = @transform_12, window_bounds = array<i64: 1, 128>}, {transform_indices = @transform_13, window_bounds = array<i64: 1, 1, 16, 128>}]} {
    %c0 = arith.constant 0 : index
    %c0_0 = arith.constant 0 : index
    %c0_1 = arith.constant 0 : index
    %c0_2 = arith.constant 0 : index
    %0 = vector.load %arg2[%c0, %c0_0, %c0_1, %c0_2] : memref<1x1x32x8xbf16, #tpu.memory_space<vmem>>, vector<1x1x32x8xbf16>
    %1 = vector.shape_cast %0 : vector<1x1x32x8xbf16> to vector<32x8xbf16>
    %c0_3 = arith.constant 0 : index
    %c0_4 = arith.constant 0 : index
    %c0_5 = arith.constant 0 : index
    %c0_6 = arith.constant 0 : index
    %2 = vector.load %arg4[%c0_3, %c0_4, %c0_5, %c0_6] : memref<1x1x32x1xf32, #tpu.memory_space<vmem>>, vector<1x1x32x1xf32>
    %3 = vector.shape_cast %2 : vector<1x1x32x1xf32> to vector<32x1xf32>
    %c0_7 = arith.constant 0 : index
    %c0_8 = arith.constant 0 : index
    %c0_9 = arith.constant 0 : index
    %4 = vector.load %arg3[%c0_7, %c0_8, %c0_9] : memref<1x1x32xf32, #tpu.memory_space<vmem>>, vector<1x1x32xf32>
    %5 = vector.shape_cast %4 : vector<1x1x32xf32> to vector<1x32xf32>
    %c0_10 = arith.constant 0 : index
    %c0_11 = arith.constant 0 : index
    %c0_12 = arith.constant 0 : index
    %c0_13 = arith.constant 0 : index
    %6 = vector.load %arg5[%c0_10, %c0_11, %c0_12, %c0_13] : memref<1x1x32x16xbf16, #tpu.memory_space<vmem>>, vector<1x1x32x16xbf16>
    %7 = vector.shape_cast %6 : vector<1x1x32x16xbf16> to vector<32x16xbf16>
    %8 = tpu.iota {dimensions = array<i32: 0>} : vector<32x1xi32>
    %c16_i32 = arith.constant 16 : i32
    %9 = arith.muli %arg1, %c16_i32 : i32
    %10 = vector.broadcast %9 : i32 to vector<32x1xi32>
    %11 = arith.addi %10, %8 : vector<32x1xi32>
    %c0_i32 = arith.constant 0 : i32
    %12 = vector.broadcast %c0_i32 : i32 to vector<32x1xi32>
    %13 = arith.addi %11, %12 : vector<32x1xi32>
    %c4_i32 = arith.constant 4 : i32
    %c0_i32_14 = arith.constant 0 : i32
    %14 = arith.cmpi eq, %c4_i32, %c0_i32_14 : i32
    %c1_i32 = arith.constant 1 : i32
    %15 = arith.select %14, %c1_i32, %c4_i32 : i32
    %16 = vector.broadcast %15 : i32 to vector<32x1xi32>
    %17 = arith.remsi %13, %16 : vector<32x1xi32>
    %c0_i32_15 = arith.constant 0 : i32
    %18 = vector.broadcast %c0_i32_15 : i32 to vector<32x1xi32>
    %19 = arith.cmpi ne, %17, %18 : vector<32x1xi32>
    %c0_i32_16 = arith.constant 0 : i32
    %20 = vector.broadcast %c0_i32_16 : i32 to vector<32x1xi32>
    %21 = arith.cmpi slt, %17, %20 : vector<32x1xi32>
    %c0_i32_17 = arith.constant 0 : i32
    %22 = arith.cmpi slt, %15, %c0_i32_17 : i32
    %23 = vector.broadcast %22 : i1 to vector<32x1xi1>
    %24 = vector.broadcast %23 : vector<32x1xi1> to vector<32x1xi1>
    %25 = arith.xori %21, %24 : vector<32x1xi1>
    %26 = arith.andi %25, %19 : vector<32x1xi1>
    %27 = vector.broadcast %15 : i32 to vector<32x1xi32>
    %28 = arith.addi %17, %27 : vector<32x1xi32>
    %29 = arith.select %26, %28, %17 : vector<32x1xi1>, vector<32x1xi32>
    %cst = arith.constant 0.000000e+00 : bf16
    %30 = vector.broadcast %cst : bf16 to vector<32x8xbf16>
    %c0_i32_18 = arith.constant 0 : i32
    %31 = vector.broadcast %c0_i32_18 : i32 to vector<32x1xi32>
    %32 = arith.cmpi eq, %29, %31 : vector<32x1xi32>
    %33 = vector.shape_cast %32 : vector<32x1xi1> to vector<32x1xi1>
    %34 = vector.broadcast %33 : vector<32x1xi1> to vector<32x8xi1>
    %35 = arith.select %34, %1, %30 : vector<32x8xi1>, vector<32x8xbf16>
    %c1_i32_19 = arith.constant 1 : i32
    %36 = vector.broadcast %c1_i32_19 : i32 to vector<32x1xi32>
    %37 = arith.cmpi eq, %29, %36 : vector<32x1xi32>
    %38 = vector.shape_cast %37 : vector<32x1xi1> to vector<32x1xi1>
    %39 = vector.broadcast %38 : vector<32x1xi1> to vector<32x8xi1>
    %40 = arith.select %39, %1, %30 : vector<32x8xi1>, vector<32x8xbf16>
    %c2_i32 = arith.constant 2 : i32
    %41 = vector.broadcast %c2_i32 : i32 to vector<32x1xi32>
    %42 = arith.cmpi eq, %29, %41 : vector<32x1xi32>
    %43 = vector.shape_cast %42 : vector<32x1xi1> to vector<32x1xi1>
    %44 = vector.broadcast %43 : vector<32x1xi1> to vector<32x8xi1>
    %45 = arith.select %44, %1, %30 : vector<32x8xi1>, vector<32x8xbf16>
    %c3_i32 = arith.constant 3 : i32
    %46 = vector.broadcast %c3_i32 : i32 to vector<32x1xi32>
    %47 = arith.cmpi eq, %29, %46 : vector<32x1xi32>
    %48 = vector.shape_cast %47 : vector<32x1xi1> to vector<32x1xi1>
    %49 = vector.broadcast %48 : vector<32x1xi1> to vector<32x8xi1>
    %50 = arith.select %49, %1, %30 : vector<32x8xi1>, vector<32x8xbf16>
    %51 = tpu.concatenate %35, %40, %45, %50 in 1 : vector<32x8xbf16>, vector<32x8xbf16>, vector<32x8xbf16>, vector<32x8xbf16> -> vector<32x32xbf16>
    %c0_20 = arith.constant 0 : index
    %c0_21 = arith.constant 0 : index
    %52 = vector.load %arg6[%c0_20, %c0_21] : memref<32x32xbf16, #tpu.memory_space<vmem>>, vector<32x32xbf16>
    %cst_22 = arith.constant dense<0.000000e+00> : vector<32x32xf32>
    %53 = tpu.matmul %51, %52, %cst_22 {dimension_numbers = #tpu.dot_dimension_numbers<[1], [0], [0], [1], [0, 0, 1, 1], [], []>} : vector<32x32xbf16>, vector<32x32xbf16>, vector<32x32xf32> -> vector<32x32xf32>
    %54 = vector.broadcast %5 : vector<1x32xf32> to vector<32x32xf32>
    %55 = arith.addf %53, %54 : vector<32x32xf32>
    %56 = vector.broadcast %3 : vector<32x1xf32> to vector<32x32xf32>
    %57 = arith.mulf %55, %56 : vector<32x32xf32>
    %c0_23 = arith.constant 0 : index
    %c0_24 = arith.constant 0 : index
    %58 = vector.load %arg8[%c0_23, %c0_24] : memref<2x64xf32, #tpu.memory_space<vmem>>, vector<2x64xf32>
    %c0_25 = arith.constant 0 : index
    %c0_26 = arith.constant 0 : index
    %59 = vector.load %arg10[%c0_25, %c0_26] : memref<1x64xf32, #tpu.memory_space<vmem>>, vector<1x64xf32>
    %cst_27 = arith.constant 0.000000e+00 : f32
    %60 = vector.broadcast %cst_27 : f32 to vector<32x32xf32>
    %c1_i32_28 = arith.constant 1 : i32
    %61 = tpu.dynamic_rotate %57 by %c1_i32_28 dim 0 : vector<32x32xf32>, i32 -> vector<32x32xf32>
    %c-1_i32 = arith.constant -1 : i32
    %62 = vector.broadcast %c-1_i32 : i32 to vector<32x1xi32>
    %63 = arith.addi %8, %62 : vector<32x1xi32>
    %c0_i32_29 = arith.constant 0 : i32
    %64 = vector.broadcast %c0_i32_29 : i32 to vector<32x1xi32>
    %65 = arith.cmpi sge, %63, %64 : vector<32x1xi32>
    %c-1_i32_30 = arith.constant -1 : i32
    %66 = vector.broadcast %c-1_i32_30 : i32 to vector<32x1xi32>
    %67 = arith.addi %8, %66 : vector<32x1xi32>
    %c32_i32 = arith.constant 32 : i32
    %68 = vector.broadcast %c32_i32 : i32 to vector<32x1xi32>
    %69 = arith.cmpi slt, %67, %68 : vector<32x1xi32>
    %70 = arith.andi %65, %69 : vector<32x1xi1>
    %cst_31 = arith.constant 0.000000e+00 : f32
    %71 = vector.shape_cast %70 : vector<32x1xi1> to vector<32x1xi1>
    %72 = vector.broadcast %71 : vector<32x1xi1> to vector<32x32xi1>
    %73 = vector.broadcast %cst_31 : f32 to vector<32x32xf32>
    %74 = arith.select %72, %61, %73 : vector<32x32xi1>, vector<32x32xf32>
    %75 = arith.truncf %74 : vector<32x32xf32> to vector<32x32xbf16>
    %76 = arith.truncf %57 : vector<32x32xf32> to vector<32x32xbf16>
    %c31_i32 = arith.constant 31 : i32
    %77 = tpu.dynamic_rotate %57 by %c31_i32 dim 0 : vector<32x32xf32>, i32 -> vector<32x32xf32>
    %c1_i32_32 = arith.constant 1 : i32
    %78 = vector.broadcast %c1_i32_32 : i32 to vector<32x1xi32>
    %79 = arith.addi %8, %78 : vector<32x1xi32>
    %c0_i32_33 = arith.constant 0 : i32
    %80 = vector.broadcast %c0_i32_33 : i32 to vector<32x1xi32>
    %81 = arith.cmpi sge, %79, %80 : vector<32x1xi32>
    %c1_i32_34 = arith.constant 1 : i32
    %82 = vector.broadcast %c1_i32_34 : i32 to vector<32x1xi32>
    %83 = arith.addi %8, %82 : vector<32x1xi32>
    %c32_i32_35 = arith.constant 32 : i32
    %84 = vector.broadcast %c32_i32_35 : i32 to vector<32x1xi32>
    %85 = arith.cmpi slt, %83, %84 : vector<32x1xi32>
    %86 = arith.andi %81, %85 : vector<32x1xi1>
    %cst_36 = arith.constant 0.000000e+00 : f32
    %87 = vector.shape_cast %86 : vector<32x1xi1> to vector<32x1xi1>
    %88 = vector.broadcast %87 : vector<32x1xi1> to vector<32x32xi1>
    %89 = vector.broadcast %cst_36 : f32 to vector<32x32xf32>
    %90 = arith.select %88, %77, %89 : vector<32x32xi1>, vector<32x32xf32>
    %91 = arith.truncf %90 : vector<32x32xf32> to vector<32x32xbf16>
    %92 = tpu.concatenate %75, %76, %91, %7 in 1 : vector<32x32xbf16>, vector<32x32xbf16>, vector<32x32xbf16>, vector<32x16xbf16> -> vector<32x112xbf16>
    %c0_37 = arith.constant 0 : index
    %c0_38 = arith.constant 0 : index
    %c0_39 = arith.constant 0 : index
    %93 = vector.load %arg7[%c0_37, %c0_38, %c0_39] : memref<2x112x64xbf16, #tpu.memory_space<vmem>>, vector<1x112x64xbf16>
    %94 = vector.shape_cast %93 : vector<1x112x64xbf16> to vector<112x64xbf16>
    %cst_40 = arith.constant dense<0.000000e+00> : vector<32x64xf32>
    %95 = tpu.matmul %92, %94, %cst_40 {dimension_numbers = #tpu.dot_dimension_numbers<[1], [0], [0], [1], [0, 0, 1, 1], [], []>} : vector<32x112xbf16>, vector<112x64xbf16>, vector<32x64xf32> -> vector<32x64xf32>
    %96 = vector.extract_strided_slice %58 {offsets = [0, 0], sizes = [1, 64], strides = [1, 1]} : vector<2x64xf32> to vector<1x64xf32>
    %97 = vector.broadcast %96 : vector<1x64xf32> to vector<32x64xf32>
    %98 = arith.addf %95, %97 : vector<32x64xf32>
    %99 = math.tanh %98 : vector<32x64xf32>
    %100 = vector.extract_strided_slice %99 {offsets = [0, 0], sizes = [32, 32], strides = [1, 1]} : vector<32x64xf32> to vector<32x32xf32>
    %101 = vector.extract_strided_slice %99 {offsets = [0, 32], sizes = [32, 32], strides = [1, 1]} : vector<32x64xf32> to vector<32x32xf32>
    %cst_41 = arith.constant 5.000000e-01 : f32
    %102 = vector.broadcast %cst_41 : f32 to vector<32x32xf32>
    %103 = arith.mulf %102, %101 : vector<32x32xf32>
    %cst_42 = arith.constant 5.000000e-01 : f32
    %104 = vector.broadcast %cst_42 : f32 to vector<32x32xf32>
    %105 = arith.addf %103, %104 : vector<32x32xf32>
    %106 = arith.mulf %100, %105 : vector<32x32xf32>
    %107 = arith.truncf %106 : vector<32x32xf32> to vector<32x32xbf16>
    %c0_43 = arith.constant 0 : index
    %c0_44 = arith.constant 0 : index
    %c0_45 = arith.constant 0 : index
    %108 = vector.load %arg9[%c0_43, %c0_44, %c0_45] : memref<1x32x64xbf16, #tpu.memory_space<vmem>>, vector<1x32x64xbf16>
    %109 = vector.shape_cast %108 : vector<1x32x64xbf16> to vector<32x64xbf16>
    %cst_46 = arith.constant dense<0.000000e+00> : vector<32x64xf32>
    %110 = tpu.matmul %107, %109, %cst_46 {dimension_numbers = #tpu.dot_dimension_numbers<[1], [0], [0], [1], [0, 0, 1, 1], [], []>} : vector<32x32xbf16>, vector<32x64xbf16>, vector<32x64xf32> -> vector<32x64xf32>
    %111 = vector.broadcast %59 : vector<1x64xf32> to vector<32x64xf32>
    %112 = arith.addf %110, %111 : vector<32x64xf32>
    %113 = vector.extract_strided_slice %112 {offsets = [0, 0], sizes = [32, 32], strides = [1, 1]} : vector<32x64xf32> to vector<32x32xf32>
    %114 = arith.addf %57, %113 : vector<32x32xf32>
    %115 = vector.broadcast %3 : vector<32x1xf32> to vector<32x32xf32>
    %116 = arith.mulf %114, %115 : vector<32x32xf32>
    %117 = vector.extract_strided_slice %112 {offsets = [0, 32], sizes = [32, 32], strides = [1, 1]} : vector<32x64xf32> to vector<32x32xf32>
    %118 = arith.addf %60, %117 : vector<32x32xf32>
    %c1_i32_47 = arith.constant 1 : i32
    %119 = tpu.dynamic_rotate %116 by %c1_i32_47 dim 0 : vector<32x32xf32>, i32 -> vector<32x32xf32>
    %c-1_i32_48 = arith.constant -1 : i32
    %120 = vector.broadcast %c-1_i32_48 : i32 to vector<32x1xi32>
    %121 = arith.addi %8, %120 : vector<32x1xi32>
    %c0_i32_49 = arith.constant 0 : i32
    %122 = vector.broadcast %c0_i32_49 : i32 to vector<32x1xi32>
    %123 = arith.cmpi sge, %121, %122 : vector<32x1xi32>
    %c-1_i32_50 = arith.constant -1 : i32
    %124 = vector.broadcast %c-1_i32_50 : i32 to vector<32x1xi32>
    %125 = arith.addi %8, %124 : vector<32x1xi32>
    %c32_i32_51 = arith.constant 32 : i32
    %126 = vector.broadcast %c32_i32_51 : i32 to vector<32x1xi32>
    %127 = arith.cmpi slt, %125, %126 : vector<32x1xi32>
    %128 = arith.andi %123, %127 : vector<32x1xi1>
    %cst_52 = arith.constant 0.000000e+00 : f32
    %129 = vector.shape_cast %128 : vector<32x1xi1> to vector<32x1xi1>
    %130 = vector.broadcast %129 : vector<32x1xi1> to vector<32x32xi1>
    %131 = vector.broadcast %cst_52 : f32 to vector<32x32xf32>
    %132 = arith.select %130, %119, %131 : vector<32x32xi1>, vector<32x32xf32>
    %133 = arith.truncf %132 : vector<32x32xf32> to vector<32x32xbf16>
    %134 = arith.truncf %116 : vector<32x32xf32> to vector<32x32xbf16>
    %c31_i32_53 = arith.constant 31 : i32
    %135 = tpu.dynamic_rotate %116 by %c31_i32_53 dim 0 : vector<32x32xf32>, i32 -> vector<32x32xf32>
    %c1_i32_54 = arith.constant 1 : i32
    %136 = vector.broadcast %c1_i32_54 : i32 to vector<32x1xi32>
    %137 = arith.addi %8, %136 : vector<32x1xi32>
    %c0_i32_55 = arith.constant 0 : i32
    %138 = vector.broadcast %c0_i32_55 : i32 to vector<32x1xi32>
    %139 = arith.cmpi sge, %137, %138 : vector<32x1xi32>
    %c1_i32_56 = arith.constant 1 : i32
    %140 = vector.broadcast %c1_i32_56 : i32 to vector<32x1xi32>
    %141 = arith.addi %8, %140 : vector<32x1xi32>
    %c32_i32_57 = arith.constant 32 : i32
    %142 = vector.broadcast %c32_i32_57 : i32 to vector<32x1xi32>
    %143 = arith.cmpi slt, %141, %142 : vector<32x1xi32>
    %144 = arith.andi %139, %143 : vector<32x1xi1>
    %cst_58 = arith.constant 0.000000e+00 : f32
    %145 = vector.shape_cast %144 : vector<32x1xi1> to vector<32x1xi1>
    %146 = vector.broadcast %145 : vector<32x1xi1> to vector<32x32xi1>
    %147 = vector.broadcast %cst_58 : f32 to vector<32x32xf32>
    %148 = arith.select %146, %135, %147 : vector<32x32xi1>, vector<32x32xf32>
    %149 = arith.truncf %148 : vector<32x32xf32> to vector<32x32xbf16>
    %150 = tpu.concatenate %133, %134, %149, %7 in 1 : vector<32x32xbf16>, vector<32x32xbf16>, vector<32x32xbf16>, vector<32x16xbf16> -> vector<32x112xbf16>
    %c1 = arith.constant 1 : index
    %c0_59 = arith.constant 0 : index
    %c0_60 = arith.constant 0 : index
    %151 = vector.load %arg7[%c1, %c0_59, %c0_60] : memref<2x112x64xbf16, #tpu.memory_space<vmem>>, vector<1x112x64xbf16>
    %152 = vector.shape_cast %151 : vector<1x112x64xbf16> to vector<112x64xbf16>
    %cst_61 = arith.constant dense<0.000000e+00> : vector<32x64xf32>
    %153 = tpu.matmul %150, %152, %cst_61 {dimension_numbers = #tpu.dot_dimension_numbers<[1], [0], [0], [1], [0, 0, 1, 1], [], []>} : vector<32x112xbf16>, vector<112x64xbf16>, vector<32x64xf32> -> vector<32x64xf32>
    %154 = vector.extract_strided_slice %58 {offsets = [1, 0], sizes = [1, 64], strides = [1, 1]} : vector<2x64xf32> to vector<1x64xf32>
    %155 = vector.broadcast %154 : vector<1x64xf32> to vector<32x64xf32>
    %156 = arith.addf %153, %155 : vector<32x64xf32>
    %157 = math.tanh %156 : vector<32x64xf32>
    %158 = vector.extract_strided_slice %157 {offsets = [0, 0], sizes = [32, 32], strides = [1, 1]} : vector<32x64xf32> to vector<32x32xf32>
    %159 = vector.extract_strided_slice %157 {offsets = [0, 32], sizes = [32, 32], strides = [1, 1]} : vector<32x64xf32> to vector<32x32xf32>
    %cst_62 = arith.constant 5.000000e-01 : f32
    %160 = vector.broadcast %cst_62 : f32 to vector<32x32xf32>
    %161 = arith.mulf %160, %159 : vector<32x32xf32>
    %cst_63 = arith.constant 5.000000e-01 : f32
    %162 = vector.broadcast %cst_63 : f32 to vector<32x32xf32>
    %163 = arith.addf %161, %162 : vector<32x32xf32>
    %164 = arith.mulf %158, %163 : vector<32x32xf32>
    %165 = arith.truncf %164 : vector<32x32xf32> to vector<32x32xbf16>
    %c0_64 = arith.constant 0 : index
    %c0_65 = arith.constant 0 : index
    %166 = vector.load %arg11[%c0_64, %c0_65] : memref<32x32xbf16, #tpu.memory_space<vmem>>, vector<32x32xbf16>
    %cst_66 = arith.constant dense<0.000000e+00> : vector<32x32xf32>
    %167 = tpu.matmul %165, %166, %cst_66 {dimension_numbers = #tpu.dot_dimension_numbers<[1], [0], [0], [1], [0, 0, 1, 1], [], []>} : vector<32x32xbf16>, vector<32x32xbf16>, vector<32x32xf32> -> vector<32x32xf32>
    %168 = arith.addf %118, %167 : vector<32x32xf32>
    %c0_67 = arith.constant 0 : index
    %c0_68 = arith.constant 0 : index
    %169 = vector.load %arg12[%c0_67, %c0_68] : memref<1x32xf32, #tpu.memory_space<vmem>>, vector<1x32xf32>
    %170 = vector.broadcast %169 : vector<1x32xf32> to vector<32x32xf32>
    %171 = arith.addf %168, %170 : vector<32x32xf32>
    %172 = vector.broadcast %3 : vector<32x1xf32> to vector<32x32xf32>
    %173 = arith.mulf %171, %172 : vector<32x32xf32>
    %174 = vector.extract_strided_slice %173 {offsets = [8, 0], sizes = [16, 32], strides = [1, 1]} : vector<32x32xf32> to vector<16x32xf32>
    %175 = arith.truncf %174 : vector<16x32xf32> to vector<16x32xbf16>
    %c0_69 = arith.constant 0 : index
    %c0_70 = arith.constant 0 : index
    %176 = vector.load %arg13[%c0_69, %c0_70] : memref<32x128xbf16, #tpu.memory_space<vmem>>, vector<32x128xbf16>
    %cst_71 = arith.constant dense<0.000000e+00> : vector<16x128xf32>
    %177 = tpu.matmul %175, %176, %cst_71 {dimension_numbers = #tpu.dot_dimension_numbers<[1], [0], [0], [1], [0, 0, 1, 1], [], []>} : vector<16x32xbf16>, vector<32x128xbf16>, vector<16x128xf32> -> vector<16x128xf32>
    %c0_72 = arith.constant 0 : index
    %c0_73 = arith.constant 0 : index
    %178 = vector.load %arg14[%c0_72, %c0_73] : memref<1x128xf32, #tpu.memory_space<vmem>>, vector<1x128xf32>
    %179 = vector.broadcast %178 : vector<1x128xf32> to vector<16x128xf32>
    %180 = arith.addf %177, %179 : vector<16x128xf32>
    %181 = arith.truncf %180 : vector<16x128xf32> to vector<16x128xbf16>
    %c0_74 = arith.constant 0 : index
    %c0_75 = arith.constant 0 : index
    %c0_76 = arith.constant 0 : index
    %c0_77 = arith.constant 0 : index
    %182 = vector.load %arg15[%c0_74, %c0_75, %c0_76, %c0_77] : memref<1x1x16x128xbf16, #tpu.memory_space<vmem>>, vector<1x1x16x128xbf16>
    %183 = vector.shape_cast %182 : vector<1x1x16x128xbf16> to vector<16x128xbf16>
    %184 = vector.shape_cast %181 : vector<16x128xbf16> to vector<1x1x16x128xbf16>
    tpu.vector_store %arg15[%c0_74, %c0_75, %c0_76, %c0_77], %184 {strides = array<i32>} : memref<1x1x16x128xbf16, #tpu.memory_space<vmem>>, vector<1x1x16x128xbf16>,
    return
  }
  func.func @transform_0(%arg0: i32, %arg1: i32) -> (i32, i32, i32, i32) {
    %c0_i32 = arith.constant 0 : i32
    %c0_i32_0 = arith.constant 0 : i32
    %c0_i32_1 = arith.constant 0 : i32
    return %arg0, %arg1, %c0_i32, %c0_i32_0 : i32, i32, i32, i32
  }
  func.func @transform_1(%arg0: i32, %arg1: i32) -> (i32, i32, i32) {
    %c0_i32 = arith.constant 0 : i32
    %c0_i32_0 = arith.constant 0 : i32
    %c0_i32_1 = arith.constant 0 : i32
    return %arg0, %c0_i32, %c0_i32_0 : i32, i32, i32
  }
  func.func @transform_2(%arg0: i32, %arg1: i32) -> (i32, i32, i32, i32) {
    %c0_i32 = arith.constant 0 : i32
    %c0_i32_0 = arith.constant 0 : i32
    %c0_i32_1 = arith.constant 0 : i32
    return %arg0, %arg1, %c0_i32, %c0_i32_0 : i32, i32, i32, i32
  }
  func.func @transform_3(%arg0: i32, %arg1: i32) -> (i32, i32, i32, i32) {
    %c0_i32 = arith.constant 0 : i32
    %c0_i32_0 = arith.constant 0 : i32
    %c0_i32_1 = arith.constant 0 : i32
    return %arg0, %arg1, %c0_i32, %c0_i32_0 : i32, i32, i32, i32
  }
  func.func @transform_4(%arg0: i32, %arg1: i32) -> (i32, i32) {
    %c0_i32 = arith.constant 0 : i32
    %c0_i32_0 = arith.constant 0 : i32
    %c0_i32_1 = arith.constant 0 : i32
    return %c0_i32, %c0_i32_0 : i32, i32
  }
  func.func @transform_5(%arg0: i32, %arg1: i32) -> (i32, i32, i32) {
    %c0_i32 = arith.constant 0 : i32
    %c0_i32_0 = arith.constant 0 : i32
    %c0_i32_1 = arith.constant 0 : i32
    %c0_i32_2 = arith.constant 0 : i32
    return %c0_i32, %c0_i32_0, %c0_i32_1 : i32, i32, i32
  }
  func.func @transform_6(%arg0: i32, %arg1: i32) -> (i32, i32) {
    %c0_i32 = arith.constant 0 : i32
    %c0_i32_0 = arith.constant 0 : i32
    %c0_i32_1 = arith.constant 0 : i32
    return %c0_i32, %c0_i32_0 : i32, i32
  }
  func.func @transform_7(%arg0: i32, %arg1: i32) -> (i32, i32, i32) {
    %c0_i32 = arith.constant 0 : i32
    %c0_i32_0 = arith.constant 0 : i32
    %c0_i32_1 = arith.constant 0 : i32
    %c0_i32_2 = arith.constant 0 : i32
    return %c0_i32, %c0_i32_0, %c0_i32_1 : i32, i32, i32
  }
  func.func @transform_8(%arg0: i32, %arg1: i32) -> (i32, i32) {
    %c0_i32 = arith.constant 0 : i32
    %c0_i32_0 = arith.constant 0 : i32
    %c0_i32_1 = arith.constant 0 : i32
    return %c0_i32, %c0_i32_0 : i32, i32
  }
  func.func @transform_9(%arg0: i32, %arg1: i32) -> (i32, i32) {
    %c0_i32 = arith.constant 0 : i32
    %c0_i32_0 = arith.constant 0 : i32
    %c0_i32_1 = arith.constant 0 : i32
    return %c0_i32, %c0_i32_0 : i32, i32
  }
  func.func @transform_10(%arg0: i32, %arg1: i32) -> (i32, i32) {
    %c0_i32 = arith.constant 0 : i32
    %c0_i32_0 = arith.constant 0 : i32
    %c0_i32_1 = arith.constant 0 : i32
    return %c0_i32, %c0_i32_0 : i32, i32
  }
  func.func @transform_11(%arg0: i32, %arg1: i32) -> (i32, i32) {
    %c0_i32 = arith.constant 0 : i32
    %c0_i32_0 = arith.constant 0 : i32
    %c0_i32_1 = arith.constant 0 : i32
    return %c0_i32, %c0_i32_0 : i32, i32
  }
  func.func @transform_12(%arg0: i32, %arg1: i32) -> (i32, i32) {
    %c0_i32 = arith.constant 0 : i32
    %c0_i32_0 = arith.constant 0 : i32
    %c0_i32_1 = arith.constant 0 : i32
    return %c0_i32, %c0_i32_0 : i32, i32
  }
  func.func @transform_13(%arg0: i32, %arg1: i32) -> (i32, i32, i32, i32) {
    %c0_i32 = arith.constant 0 : i32
    %c0_i32_0 = arith.constant 0 : i32
    %c0_i32_1 = arith.constant 0 : i32
    return %arg0, %arg1, %c0_i32, %c0_i32_0 : i32, i32, i32, i32
  }
}

</mosaic_0001>

<bundles_post_ra>
// kernel: tpu_custom_call.1
= control target key start
LH: loop header
LB: loop body
LE: loop exit
PB: predicated region body
PF: predicated region fallthrough
CT: control target
= control target key end

     0   :  { %s2740_s0 = inlined_call_operand.vmem [shape: bf16[2,2,32,8], index: 0, kind: input, shape index: {}]   ;;  %s2741_s1 = inlined_call_operand.vmem [shape: f32[2,1,32], index: 1, kind: input, shape index: {}]   ;;  %s2742_s2 = inlined_call_operand.vmem [shape: f32[2,2,32,1], index: 2, kind: input, shape index: {}]   ;;  %s2743_s3 = inlined_call_operand.vmem [shape: bf16[2,2,32,16], index: 3, kind: input, shape index: {}]   ;;  %s2744_s4 = inlined_call_operand.vmem [shape: bf16[32,32], index: 4, kind: input, shape index: {}]   ;;  %s2745_s5 = inlined_call_operand.vmem [shape: bf16[2,112,64], index: 5, kind: input, shape index: {}]   ;;  %s2746_s6 = inlined_call_operand.vmem [shape: f32[2,64], index: 6, kind: input, shape index: {}]   ;;  %s2747_s7 = inlined_call_operand.vmem [shape: bf16[1,32,64], index: 7, kind: input, shape index: {}]   ;;  %s2748_s8 = inlined_call_operand.vmem [shape: f32[1,64], index: 8, kind: input, shape index: {}]   ;;  %s2749_s9 = inlined_call_operand.vmem [shape: bf16[32,32], index: 9, kind: input, shape index: {}]   ;;  %s2750_s10 = inlined_call_operand.vmem [shape: f32[1,32], index: 10, kind: input, shape index: {}]   ;;  %s2751_s11 = inlined_call_operand.vmem [shape: bf16[32,128], index: 11, kind: input, shape index: {}]   ;;  %s2752_s12 = inlined_call_operand.vmem [shape: f32[1,128], index: 12, kind: input, shape index: {}]   ;;  %s2753_s13 = inlined_call_operand.hbm [shape: bf16[2,2,16,128], index: 13, kind: output, shape index: {}]  }
   0x1   :  { %2758 = sst [smem:[#allocation10_spill]] %s2740_s0 }
   0x2   :  { %2759 = sst [smem:[#allocation11_spill]] %s2742_s2 }
   0x3   :  { %2760 = sst [smem:[#allocation12_spill]] %s2744_s4 }
   0x4   :  { %18 = vsyncpa [#allocation3], 0 }
   0x5   :  { %20 = vsyncpa [#allocation3 + $0x1], 0  ;;  %s2252_s25 = smov 0   ;;  %s2254_s26 = smov 0  }
   0x6   :  { %s2256_s27 = smov 0   ;;  %s2258_s28 = smov 0  }
   0x7   :  { %s2260_s29 = smov 0   ;;  %s2262_s30 = smov 0  }
   0x8   :  { %s2264_s14 = smov 0   ;;  %s2266_s15 = smov 0  }
   0x9 LB: > { %2761 = sst [smem:[#allocation5_spill]] %s2161_s30  ;;  %s1757_s16 = sadd.s32 4294967295, %s2169_s15   ;;  %s2169_s15 = sphi %s2266_s15, %s26_s15   ;;  %s2165_s14 = sphi %s2264_s14, %s2781_s14   ;;  %s2161_s30 = sphi %s2262_s30, %s2780_s30   ;;  %s2157_s29 = sphi %s2260_s29, %s2779_s29   ;;  %s2153_s28 = sphi %s2258_s28, %s2778_s28   ;;  %s2149_s27 = sphi %s2256_s27, %s2784_s27   ;;  %s2145_s26 = sphi %s2254_s26, %s2783_s26   ;;  %s2141_s25 = sphi %s2252_s25, %s2782_s25  }
   0xa   : > { %2762 = sst [smem:[#allocation6_spill]] %s2165_s14  ;;  %s1758_s17 = sadd.s32 4294967294, %s2169_s15  }
   0xb   : > { %s35_s18 = sadd.s32 1, %s2161_s30  ;;  %s38_s19 = sadd.s32 1, %s2165_s14 }
   0xc   : > { %p36_p0 = scmp.ge.s32.totalorder %s35_s18, 2  ;;  %p356_p1 = scmp.ne.s32.totalorder %s2149_s27, %s2145_s26 }
   0xd   : > { %p357_p2 = scmp.eq.s32.totalorder %s1757_s16, 3  ;;  %p362_p5 = scmp.ne.s32.totalorder %s2145_s26, %s2141_s25 }
   0xe   : > { %s2786_s18 = smov (%p36_p0, %s35_s18), 0  ;;  %s2788_s19 = smov (!%p36_p0, %s38_s19), %s2165_s14 }
   0xf   : > { %2763 = sst [smem:[#allocation7_spill]] %s2786_s18  ;;  %s342_s20 = ssub.s32 %s2161_s30, %s2786_s18 }
  0x10   : > { %p2303_p3 = por %p357_p2, %p356_p1  ;;  %p40_p4 = scmp.ge.s32.totalorder %s2788_s19, 2 }
  0x11   : > { %p363_p6 = scmp.eq.s32.totalorder %s1758_s17, 3  ;;  %p1761_p7 = scmp.ge.s32.totalorder %s2169_s15, 1 }
  0x12   : > { %s2790_s19 = smov (%p40_p4, %s2788_s19), 0  ;;  %p450_p9 = scmp.lt.s32.totalorder %s2169_s15, 5 }
  0x13   : > { %2765 = sst [smem:[#allocation8_spill]] %s2790_s19  ;;  %p2312_p8 = por %p363_p6, %p362_p5 }
  0x14   : > { %s341_s23 = ssub.s32 %s2165_s14, %s2790_s19  ;;  %s346_s24 = sadd.s32 1, %s2149_s27 }
  0x15   : > { %s343_s16 = sor.u32 %s342_s20, %s341_s23  ;;  %p451_p10 = pnand %p1761_p7, %p450_p9 }
  0x16   : > { %p344_p11 = scmp.eq.s32.totalorder %s343_s16, 0  ;;  %p519_p12 = scmp.lt.s32.totalorder (!%p451_p10), %s2157_s29, 1 }
  0x17   : > { %454 = sbr.rel (%p451_p10) target bundleno = 2180 (0x884), region = 72  ;;  %p521_p13 = scmp.lt.s32.totalorder (!%p451_p10), %s2153_s28, 1 }
  0x18   : > { %s2321_s18 = scalar_select %p344_p11, %s2149_s27, %s346_s24  }
  0x19   : > { %s1772_s17 = sshll.u32 (!%p451_p10), %s2153_s28, 4  ;;  %s2768_s0 = sld [smem:[#allocation10_spill]] (!%p451_p10) }
  0x1a   : > { %2767 = sst [smem:[#allocation9_spill]] %s2321_s18  ;;  %s1841_s18 = sshll.u32 (!%p451_p10), %s2153_s28, 1 }
  0x1b   : > { %s2769_s4 = sld [smem:[#allocation12_spill]] (!%p451_p10) }
  0x1c   : > { %v563_v0 = vlaneseq  ;;  %s2327_s30 = scalar_select %p519_p12, %s2157_s29, 1  ;;  %v569_v2 = vstv %s1772_s17  ;;  %v2173_v55 = vmov 0  }
  0x1d   : > { %s522_s20 = scalar_select %p521_p13, %s2153_s28, 1  ;;  %2036 = vset.pattern.permute.xlu1 %v2173_v55  ;;  %2035 = vset.pattern.permute.xlu0 %v2173_v55 }
  0x1e   : > { %v2329_v1 = vshrl.u32 %v563_v0, 7  ;;  %s1764_s23 = sshll.u32 %s2327_s30, 3  ;;  %s2776_s2 = sld [smem:[#allocation11_spill]] }
  0x1f   : > { %s1763_s24 = sshll.u32 %s522_s20, 2  ;;  %s2171_s20 = smov 16  }
  0x20   : > { %v565_v3 = vadd.s32 8, %v2329_v1  ;;  %v570_v4 = vadd.s32 %v569_v2, %v2329_v1  ;;  %v566_v5 = vadd.s32 16, %v2329_v1  ;;  %v2337_v6 = vadd.s32 24, %v2329_v1  ;;  %s2339_s16 = sadd.s32 %s1764_s23, %s1763_s24  ;;  %s2172_s23 = smov 8  }
  0x21   : > { %s1765_s17 = sshll.u32 %s2339_s16, 2  ;;  %v2037_v21 = vld [vmem:[%s2769_s4 + $0x8] sm:$0xff]   ;;  %v2038_v41 = vld [vmem:[%s2769_s4] sm:$0xff]  }
  0x22   : > { %v571_v7 = vadd.s32 %v569_v2, %v565_v3  ;;  %v575_v8 = vsub.s32 0, %v570_v4  ;;  %v572_v9 = vadd.s32 %v569_v2, %v566_v5  ;;  %v573_v10 = vadd.s32 %v569_v2, %v2337_v6  ;;  %s2348_s24 = scalar_lea.vmem %s2768_s0, %s1765_s17  ;;  %1886 = vmatprep.subr.bf16.mxu0 %v2037_v21  ;;  %s2440_s19 = scalar_lea.vmem %s2743_s3, %s1765_s17 }
  0x23   : > { %vm574_vm0 = vcmp.lt.s32.totalorder %v570_v4, 0  ;;  %v2354_v25 = vld [vmem:[%s2348_s24] sm:$0xf]  ;;  %1887 = vmatpush3.bf16.msra.mxu0 %v2037_v21  ;;  %v2358_v30 = vld [vmem:[%s2348_s24 + $0x4] sm:$0xf]  ;;  %s2176_s17 = smov 64  }
  0x24   : > { %v1773_v11 = vmin.u32 %v575_v8, %v570_v4  ;;  %v582_v12 = vsub.s32 0, %v571_v7  ;;  %v589_v15 = vsub.s32 0, %v572_v9  ;;  %vm581_vm1 = vcmp.lt.s32.totalorder %v571_v7, 0  ;;  %1888 = vmatprep.subr.bf16.mxu0 %v2038_v41  ;;  %v2391_v47 = vld [vmem:[%s2348_s24 + $0x8] sm:$0xf]  ;;  %s2177_s0 = smov 96  }
  0x25   : > { %v596_v16 = vsub.s32 0, %v573_v10  ;;  %vm588_vm2 = vcmp.lt.s32.totalorder %v572_v9, 0  ;;  %vm595_vm6 = vcmp.lt.s32.totalorder %v573_v10, 0  ;;  %v553_v50 = vld [vmem:[%s2348_s24 + $0xc] sm:$0xf]  ;;  %s1768_s24 = sshll.u32 %s2339_s16, 3 }
  0x26   : > { %v578_v13 = vand.u32 3, %v1773_v11  ;;  %v1774_v14 = vmin.u32 %v582_v12, %v571_v7  ;;  %v1775_v19 = vmin.u32 %v589_v15, %v572_v9  ;;  %s2175_s16 = smov 32  }
  0x27   : > { %v1776_v20 = vmin.u32 %v596_v16, %v573_v10  ;;  %1889 = vmatpush3.bf16.msra.mxu0 %v2038_v41 }
  0x28   : > { %v579_v17 = vsub.s32 0, %v578_v13  ;;  %v585_v18 = vand.u32 3, %v1774_v14  ;;  %v592_v24 = vand.u32 3, %v1775_v19 }
  0x29   : > { %v599_v27 = vand.u32 3, %v1776_v20 }
  0x2a   : > { %v580_v22 = vsel %vm574_vm0, %v579_v17, %v578_v13  ;;  %v586_v23 = vsub.s32 0, %v585_v18  ;;  %v593_v29 = vsub.s32 0, %v592_v24 }
  0x2b   : > { %vm602_vm3 = vcmp.ne.s32.totalorder %v580_v22, 0  ;;  %vm606_vm4 = vcmp.lt.s32.totalorder %v580_v22, 0  ;;  %v614_v26 = vadd.s32 4, %v580_v22  ;;  %v600_v34 = vsub.s32 0, %v599_v27 }
  0x2c   : > { %v587_v28 = vsel %vm581_vm1, %v586_v23, %v585_v18  ;;  %vm610_vm5 = vmand %vm606_vm4, %vm602_vm3  ;;  %v594_v33 = vsel %vm588_vm2, %v593_v29, %v592_v24  ;;  %v2044_v29 = vld [vmem:[%s2745_s5 + $0x18] sm:$0xff]  }
  0x2d   : > { %vm603_vm7 = vcmp.ne.s32.totalorder %v587_v28, 0  ;;  %vm607_vm8 = vcmp.lt.s32.totalorder %v587_v28, 0  ;;  %v615_v31 = vadd.s32 4, %v587_v28  ;;  %v2360_v32 = vsel %vm610_vm5, %v614_v26, %v580_v22  ;;  %v2041_v26 = vld [vmem:[%s2745_s5 + $0x30] sm:$0xff]  }
  0x2e   : > { %vm611_vm9 = vmand %vm607_vm8, %vm603_vm7  ;;  %vm662_vm10 = vcmp.eq.s32.totalorder %v2360_v32, 2  ;;  %vm642_vm11 = vcmp.eq.s32.totalorder %v2360_v32, 1  ;;  %vm604_vm13 = vcmp.ne.s32.totalorder %v594_v33, 0  ;;  %vm608_vm14 = vcmp.lt.s32.totalorder %v594_v33, 0  ;;  %1894 = vmatprep.subr.bf16.mxu1 %v2041_v26 }
  0x2f   : > { %v2365_v35 = vsel %vm611_vm9, %v615_v31, %v587_v28  ;;  %vm2367_vm12 = vmpackc.low %vm662_vm10, %vm662_vm10  ;;  %v616_v37 = vadd.s32 4, %v594_v33  ;;  %v601_v40 = vsel %vm595_vm6, %v600_v34, %v599_v27  ;;  %vm682_vm7 = vcmp.eq.s32.totalorder %v2360_v32, 3  ;;  %v2042_v27 = vld [vmem:[%s2745_s5 + $0x28] sm:$0xff]   ;;  %1895 = vmatpush3.bf16.msra.mxu1 %v2041_v26  ;;  %v2043_v28 = vld [vmem:[%s2745_s5 + $0x20] sm:$0xff]  }
  0x30   : > { %vm663_vm15 = vcmp.eq.s32.totalorder %v2365_v35, 2  ;;  %v678_v38 = vsel %vm2367_vm12, %v2354_v25, 0  ;;  %vm643_vm0 = vcmp.eq.s32.totalorder %v2365_v35, 1  ;;  %vm2376_vm1 = vmpackc.low %vm642_vm11, %vm642_vm11  ;;  %vm605_vm3 = vcmp.ne.s32.totalorder %v601_v40, 0  ;;  %1896 = vmatprep.subr.bf16.mxu1 %v2042_v27  ;;  %v2045_v31 = vld [vmem:[%s2745_s5 + $0x10] sm:$0xff]  }
  0x31   : > { %vm675_vm2 = vmpackc.low %vm663_vm15, %vm663_vm15  ;;  %v658_v42 = vsel %vm2376_vm1, %v2354_v25, 0  ;;  %vm609_vm4 = vcmp.lt.s32.totalorder %v601_v40, 0  ;;  %v617_v43 = vadd.s32 4, %v601_v40 }
  0x32   : > { %v679_v44 = vsel %vm675_vm2, %v2358_v30, 0  ;;  %vm655_vm5 = vmpackc.low %vm643_vm0, %vm643_vm0 }
  0x33   : > { %v1781_v45 = vcombine.low %v678_v38, %v679_v44  ;;  %v659_v46 = vsel %vm655_vm5, %v2358_v30, 0  ;;  %vm612_vm6 = vmand %vm608_vm14, %vm604_vm13  ;;  %vm622_vm5 = vcmp.eq.s32.totalorder %v2360_v32, 0  ;;  %1897 = vmatpush3.bf16.msra.mxu1 %v2042_v27  ;;  %v1011_v27 = vsub.s32 0, %v2329_v1 }
  0x34   : > { %v1779_v48 = vcombine.low %v658_v42, %v659_v46  ;;  %vm613_vm8 = vmand %vm609_vm4, %vm605_vm3  ;;  %v620_v49 = vsel %vm612_vm6, %v616_v37, %v594_v33  ;;  %vm683_vm3 = vcmp.eq.s32.totalorder %v2365_v35, 3  ;;  %1898 = vmatprep.subr.bf16.mxu1 %v2043_v28  ;;  %v2046_v37 = vld [vmem:[%s2745_s5 + $0x8] sm:$0xff]   ;;  %v2047_v46 = vld [vmem:[%s2745_s5] sm:$0xff]  }
  0x35   : > { %736 = vrot.lane.b32.xlu1 %v1781_v45, %s2171_s20  ;;  %v621_v51 = vsel %vm613_vm8, %v617_v43, %v601_v40  ;;  %vm664_vm9 = vcmp.eq.s32.totalorder %v620_v49, 2  ;;  %vm644_vm10 = vcmp.eq.s32.totalorder %v620_v49, 1  ;;  %vm2400_vm11 = vmpackc.low %vm682_vm7, %vm682_vm7  ;;  %vm684_vm0 = vcmp.eq.s32.totalorder %v620_v49, 3 }
  0x36   : > { %722 = vrot.lane.b32.xlu0 %v1779_v48, %s2172_s23  ;;  %vm665_vm12 = vcmp.eq.s32.totalorder %v621_v51, 2  ;;  %vm676_vm13 = vmpackc.low %vm664_vm9, %vm664_vm9  ;;  %vm645_vm14 = vcmp.eq.s32.totalorder %v621_v51, 1  ;;  %vm685_vm2 = vcmp.eq.s32.totalorder %v621_v51, 3  ;;  %vm623_vm7 = vcmp.eq.s32.totalorder %v2365_v35, 0 }
  0x37   : > { %vm677_vm15 = vmpackc.low %vm665_vm12, %vm665_vm12  ;;  %v680_v53 = vsel %vm676_vm13, %v2391_v47, 0  ;;  %v698_v61 = vsel %vm2400_vm11, %v2354_v25, 0  ;;  %vm625_vm13 = vcmp.eq.s32.totalorder %v621_v51, 0  ;;  %1899 = vmatpush3.bf16.msra.mxu1 %v2043_v28  ;;  %v2476_v43 = vadd.s32 1, %v2337_v6  ;;  %v2555_v28 = vld [vmem:[%s2746_s6] sm:$0x3] }
  0x38   : > { %v681_v54 = vsel %vm677_vm15, %v553_v50, 0  ;;  %vm656_vm1 = vmpackc.low %vm644_vm10, %vm644_vm10  ;;  %vm624_vm10 = vcmp.eq.s32.totalorder %v620_v49, 0  ;;  %1900 = vmatprep.subr.bf16.mxu1 %v2044_v29 }
  0x39   : > { %v1782_v56 = vcombine.low %v680_v53, %v681_v54  ;;  %vm657_vm4 = vmpackc.low %vm645_vm14, %vm645_vm14  ;;  %v660_v57 = vsel %vm656_vm1, %v2391_v47, 0  ;;  %vm761_vm1 = vcmask 130048  }
  0x3a   : > { %v661_v58 = vsel %vm657_vm4, %v553_v50, 0  ;;  %vm696_vm6 = vmpackc.low %vm684_vm0, %vm684_vm0  ;;  %vm754_vm0 = vcmask 64512   ;;  %vm918_vm4 = vcmp.lt.s32.totalorder %v2329_v1, 7 }
  0x3b   : > { %738 = vrot.lane.b32.xlu1 %v1782_v56, %s2171_s20  ;;  %v1780_v59 = vcombine.low %v660_v57, %v661_v58  ;;  %vm697_vm8 = vmpackc.low %vm685_vm2, %vm685_vm2  ;;  %v700_v60 = vsel %vm696_vm6, %v2391_v47, 0  ;;  %s539_s20 = scalar_lea.vmem %s2776_s2, %s1768_s24  ;;  %vm766_vm2 = vcmask 195584   ;;  %1901 = vmatpush3.bf16.msra.mxu1 %v2044_v29  ;;  %s530_s24 = scalar_lea.vmem %s2741_s1, %s2327_s30  ;;  %v1012_v29 = vrot.slane %v2555_v28, %v1011_v27 }
  0x3c   : > { %v701_v62 = vsel %vm697_vm8, %v553_v50, 0  ;;  %vm695_vm9 = vmpackc.low %vm683_vm3, %vm683_vm3  ;;  %v555_v8 = vld [vmem:[%s539_s20 + $0x8] sm:$0xff]  ;;  %v554_v11 = vld [vmem:[%s539_s20] sm:$0xff]  ;;  %vm793_vm3 = vcmask 261120   ;;  %1902 = vmatprep.subr.bf16.mxu1 %v2045_v31  ;;  %vm985_vm8 = vcmask 523264   ;;  %s1842_s30 = sshll.u32 %s2157_s29, 2 }
  0x3d   : > { %724 = vrot.lane.b32.xlu0 %v1780_v59, %s2172_s23  ;;  %v1784_v63 = vcombine.low %v700_v60, %v701_v62  ;;  %v699_v0 = vsel %vm695_vm9, %v2358_v30, 0  ;;  %vm634_vm12 = vmpackc.low %vm622_vm5, %vm622_vm5  ;;  %s2174_s23 = smov 24   ;;  %v556_v12 = vld [vmem:[%s539_s20 + $0x10] sm:$0xff]  ;;  %v557_v13 = vld [vmem:[%s539_s20 + $0x18] sm:$0xff]  ;;  %vm934_vm5 = vcmp.lt.s32.totalorder %v2476_v43, 32  ;;  %vm990_vm9 = vcmask 785408  }
  0x3e   : > { %v1783_v2 = vcombine.low %v698_v61, %v699_v0  ;;  %vm635_vm11 = vmpackc.low %vm623_vm7, %vm623_vm7  ;;  %v638_v3 = vsel %vm634_vm12, %v2354_v25, 0  ;;  %v1785_v32 = vld [vmem:[%s530_s24] ss:$0 sm:$0xff]  ;;  %vm877_vm7 = vcmp.lt.s32.totalorder %v2329_v1, 1  ;;  %vm2179_vm12 = vmmov 0  }
  0x3f   : > { %752 = vrot.lane.b32.xlu1 %v1784_v63, %s2174_s23  ;;  %v639_v4 = vsel %vm635_vm11, %v2358_v30, 0  ;;  %vm636_vm14 = vmpackc.low %vm624_vm10, %vm624_vm10  ;;  %1903 = vmatpush3.bf16.msra.mxu1 %v2045_v31  ;;  %v2039_v63 = vld [vmem:[%s2440_s19 + $0x8] sm:$0xff]   ;;  %v2040_v0 = vld [vmem:[%s2440_s19] sm:$0xff]   ;;  %vm1055_vm10 = vcmask 916480  }
  0x40   : > { %v1777_v5 = vcombine.low %v638_v3, %v639_v4  ;;  %vm637_vm15 = vmpackc.low %vm625_vm13, %vm625_vm13  ;;  %v640_v7 = vsel %vm636_vm14, %v2391_v47, 0  ;;  %1904 = vmatprep.subr.bf16.mxu1 %v2046_v37  ;;  %v2520_v3 = vadd.s32 4294967295, %v2329_v1 }
  0x41   : > { %750 = vrot.lane.b32.xlu0 %v1783_v2, %s2174_s23  ;;  %v641_v9 = vsel %vm637_vm15, %v553_v50, 0  ;;  %s1618_s23 = sadd.s32 %s1842_s30, %s1841_s18  ;;  %s2180_s30 = smov [#allocation2]  }
  0x42   : > { %v1778_v10 = vcombine.low %v640_v7, %v641_v9  ;;  %vm886_vm6 = vcmp.ge.s32.totalorder %v2520_v3, 0  ;;  %s1843_s20 = sshll.u32 %s1618_s23, 6  ;;  %s2081_s23 = sshll.u32 %s2180_s30, 4  ;;  %s2082_s23 = int_to_ptr.vmem [resolvable:$false] %s2081_s23 }
  0x43   : > { %854 = vperm.xlu1 %2036, %v555_v8   ;;  %1905 = vmatpush3.bf16.msra.mxu1 %v2046_v37  ;;  %s2083_s19 = scalar_lea.vmem %s2082_s23, 256 }
  0x44   : > { %1906 = vmatprep.subr.bf16.mxu1 %v2047_v46 }
  0x45   : > { %849 = vperm.xlu0 %2035, %v554_v11  }
  0x47   : > { %859 = vperm.xlu1 %2036, %v556_v12   ;;  %1907 = vmatpush3.bf16.msra.mxu1 %v2047_v46  ;;  %v2049_v46 = vld [vmem:[%s2747_s7] sm:$0xff]  }
  0x49   : > { %864 = vperm.xlu0 %2035, %v557_v13  }
  0xa7   : > { %v737_v14 = vpop.permute.xlu1 %736 }
  0xa8   : > { %v723_v15 = vpop.permute.xlu0 %722 }
  0xa9   : > { %v757_v18 = vsel %vm754_vm0, %v1777_v5, %v723_v15 }
  0xaa   : > { %v763_v24 = vsel %vm761_vm1, %v757_v18, %v737_v14 }
  0xad   : > { %v739_v16 = vpop.permute.xlu1 %738 }
  0xaf   : > { %v725_v17 = vpop.permute.xlu0 %724 }
  0xb0   : > { %v760_v19 = vsel %vm754_vm0, %v1778_v10, %v725_v17 }
  0xb1   : > { %v753_v20 = vpop.permute.xlu1 %752  ;;  %v765_v21 = vsel %vm761_vm1, %v760_v19, %v739_v16 }
  0xb2   : > { %v770_v22 = vsel %vm766_vm2, %v765_v21, %v753_v20 }
  0xb3   : > { %v751_v23 = vpop.permute.xlu0 %750 }
  0xb4   : > { %v768_v25 = vsel %vm766_vm2, %v763_v24, %v751_v23 }
  0xb5   : > { %1890 = vmatprep.mubr.msk.bf16.mxu0 %vm793_vm3, %v768_v25 }
  0xb6   : > { %1891 = vmatmul.mubr.msk.bf16.vlgmr.msra.gmra.mxu0 %vm793_vm3, %v770_v22 }
  0xbe   : > { %v2454_v30 = vpop.permute.xlu1 %854 }
  0xc0   : > { %v2463_v33 = vpop.permute.xlu0 %849 }
  0xc2   : > { %v2465_v36 = vpop.permute.xlu1 %859 }
  0xc4   : > { %v2473_v42 = vpop.permute.xlu0 %864 }
 0x176   : > { %v1892_v34 = vpop.f32.mrf.mxu0 }
 0x177   : > { %v841_v35 = vadd.f32 %v1892_v34, %v1785_v32 }
 0x178   : > { %v832_v38 = vpop.f32.mrf.mxu0 }
 0x179   : > { %v833_v39 = vadd.f32 %v1785_v32, %v832_v38  ;;  %v2471_v40 = vmul.f32 %v2465_v36, %v841_v35 }
 0x17a   : > { %v1893_v41 = vpop.f32.mrf.mxu0 }
 0x17b   : > { %v2479_v44 = vmul.f32 %v2463_v33, %v833_v39  ;;  %v844_v45 = vadd.f32 %v1893_v41, %v1785_v32  ;;  %v916_v50 = vrot.slane %v2471_v40, 1  ;;  %v875_v10 = vrot.slane %v2471_v40, 7 }
 0x17c   : > { %v835_v47 = vpop.f32.mrf.mxu0 }
 0x17d   : > { %v2485_v48 = vmul.f32 %v2473_v42, %v844_v45  ;;  %v836_v49 = vadd.f32 %v1785_v32, %v835_v47  ;;  %v914_v52 = vrot.slane %v2479_v44, 1  ;;  %v873_v4 = vrot.slane %v2479_v44, 7  ;;  %v2048_v45 = vld [vmem:[%s2747_s7 + $0x8] sm:$0xff]  }
 0x17e   : > { %1912 = vmatprep.subr.bf16.mxu0 %v2048_v45 }
 0x17f   : > { %v2491_v6 = vmul.f32 %v2454_v30, %v836_v49  ;;  %v913_v51 = vpack.c.bf16 %v2485_v48, %v2471_v40  ;;  %v917_v53 = vrot.slane %v2485_v48, 1  ;;  %v876_v2 = vrot.slane %v2485_v48, 7  ;;  %1913 = vmatpush3.bf16.msra.mxu0 %v2048_v45 }
 0x180   : > { %1914 = vmatprep.subr.bf16.mxu0 %v2049_v46 }
 0x181   : > { %957 = vrot.lane.b32.xlu0 %v913_v51, %s2175_s16  ;;  %v912_v54 = vpack.c.bf16 %v2491_v6, %v2479_v44  ;;  %v919_v55 = vsel %vm918_vm4, %v916_v50, %v917_v53  ;;  %v922_v56 = vsel %vm918_vm4, %v917_v53, %v914_v52  ;;  %v915_v58 = vrot.slane %v2491_v6, 1 }
 0x182   : > { %v950_v57 = vsel %vm934_vm5, %v922_v56, 0.0  ;;  %v874_v5 = vrot.slane %v2491_v6, 7  ;;  %v881_v8 = vsel %vm877_vm7, %v876_v2, %v873_v4  ;;  %v878_v16 = vsel %vm877_vm7, %v875_v10, %v876_v2 }
 0x183   : > { %955 = vrot.lane.b32.xlu1 %v912_v54, %s2175_s16  ;;  %v952_v59 = vpack.c.bf16 %v950_v57, %v919_v55  ;;  %v920_v60 = vsel %vm918_vm4, %v915_v58, %v916_v50  ;;  %v921_v61 = vsel %vm918_vm4, %v914_v52, %v915_v58  ;;  %v906_v12 = vsel %vm886_vm6, %v881_v8, 0.0  ;;  %1915 = vmatpush3.bf16.msra.mxu0 %v2049_v46 }
 0x184   : > { %v951_v62 = vpack.c.bf16 %v920_v60, %v921_v61  ;;  %v880_v11 = vsel %vm877_vm7, %v873_v4, %v874_v5  ;;  %v879_v14 = vsel %vm877_vm7, %v874_v5, %v875_v10  ;;  %v2051_v10 = vld [vmem:[%s2745_s5 + $0x60] sm:$0xff]  }
 0x185   : > { %963 = vrot.lane.b32.xlu0 %v952_v59, %s2176_s17  ;;  %v910_v17 = vpack.c.bf16 %v880_v11, %v906_v12  ;;  %v911_v18 = vpack.c.bf16 %v878_v16, %v879_v14  ;;  %v2052_v11 = vld [vmem:[%s2745_s5 + $0x58] sm:$0xff]   ;;  %v2053_v12 = vld [vmem:[%s2745_s5 + $0x50] sm:$0xff]   ;;  %v1801_v14 = vld [vmem:[%s2748_s8] ss:$0 sm:$0xff] }
 0x186   : > { %v2055_v16 = vld [vmem:[%s2745_s5 + $0x40] sm:$0xff]  }
 0x187   : > { %961 = vrot.lane.b32.xlu1 %v951_v62, %s2176_s17 }
 0x189   : > { %977 = vrot.lane.b32.xlu0 %v2039_v63, %s2177_s0 }
 0x18b   : > { %975 = vrot.lane.b32.xlu1 %v2040_v0, %s2177_s0 }
 0x1f3   : > { %v958_v7 = vpop.permute.xlu0 %957 }
 0x1f4   : > { %v984_v21 = vsel %vm793_vm3, %v911_v18, %v958_v7 }
 0x1f5   : > { %v956_v9 = vpop.permute.xlu1 %955 }
 0x1f6   : > { %v981_v19 = vsel %vm793_vm3, %v910_v17, %v956_v9  ;;  %v2050_v9 = vld [vmem:[%s2745_s5 + $0x68] sm:$0xff]  }
 0x1f7   : > { %v964_v13 = vpop.permute.xlu0 %963  ;;  %1920 = vmatprep.subr.bf16.mxu0 %v2050_v9 }
 0x1f8   : > { %v989_v24 = vsel %vm985_vm8, %v984_v21, %v964_v13  ;;  %v2054_v13 = vld [vmem:[%s2745_s5 + $0x48] sm:$0xff]  }
 0x1f9   : > { %v962_v15 = vpop.permute.xlu1 %961 }
 0x1fa   : > { %v987_v22 = vsel %vm985_vm8, %v981_v19, %v962_v15 }
 0x1fb   : > { %v2538_v20 = vpop.permute.xlu0 %977 }
 0x1fc   : > { %v994_v26 = vsel %vm990_vm9, %v989_v24, %v2538_v20  ;;  %v2056_v24 = vld [vmem:[%s2745_s5 + $0x38] sm:$0xff]  }
 0x1fd   : > { %v2542_v23 = vpop.permute.xlu1 %975 }
 0x1fe   : > { %v992_v25 = vsel %vm990_vm9, %v987_v22, %v2542_v23 }
 0x1ff   : > { %1908 = vmatprep.mubr.msk.bf16.mxu1 %vm1055_vm10, %v992_v25 }
 0x200   : > { %1909 = vmatmul.mubr.msk.bf16.vlgmr.msra.gmra.mxu1 %vm1055_vm10, %v994_v26 }
 0x2c0   : > { %v1910_v31 = vpop.f32.mrf.mxu1 }
 0x2c1   : > { %v1103_v32 = vadd.f32 %v1910_v31, %v1012_v29 }
 0x2c2   : > { %v1094_v34 = vpop.f32.mrf.mxu1 }
 0x2c3   : > { %v1095_v35 = vadd.f32 %v1094_v34, %v1012_v29  ;;  %2061 = vtanh.f32 %v1103_v32 }
 0x2c4   : > { %v1911_v37 = vpop.f32.mrf.mxu1 }
 0x2c5   : > { %2063 = vtanh.f32 %v1095_v35  ;;  %v1106_v38 = vadd.f32 %v1911_v37, %v1012_v29 }
 0x2c6   : > { %v1097_v39 = vpop.f32.mrf.mxu1 }
 0x2c7   : > { %v1098_v41 = vadd.f32 %v1097_v39, %v1012_v29  ;;  %2065 = vtanh.f32 %v1106_v38 }
 0x2c9   : > { %2067 = vtanh.f32 %v1098_v41 }
 0x2d0   : > { %v2062_v47 = vpop.eup %2061 }
 0x2d1   : > { %v1115_v53 = vmul.f32 0.5, %v2062_v47 }
 0x2d2   : > { %v2064_v49 = vpop.eup %2063 }
 0x2d3   : > { %v1113_v50 = vmul.f32 0.5, %v2064_v49  ;;  %v1119_v57 = vadd.f32 0.5, %v1115_v53 }
 0x2d4   : > { %v2066_v51 = vpop.eup %2065 }
 0x2d5   : > { %v1117_v52 = vadd.f32 0.5, %v1113_v50  ;;  %v1116_v58 = vmul.f32 0.5, %v2066_v51 }
 0x2d6   : > { %v2068_v54 = vpop.eup %2067 }
 0x2d7   : > { %1125 = vrot.lane.b32.xlu1 %v1117_v52, %s2177_s0  ;;  %v1114_v55 = vmul.f32 0.5, %v2068_v54  ;;  %v1120_v59 = vadd.f32 0.5, %v1116_v58 }
 0x2d9   : > { %v1118_v56 = vadd.f32 0.5, %v1114_v55 }
 0x2db   : > { %1127 = vrot.lane.b32.xlu0 %v1118_v56, %s2177_s0  ;;  %1129 = vrot.lane.b32.xlu1 %v1119_v57, %s2177_s0 }
 0x2df   : > { %1131 = vrot.lane.b32.xlu0 %v1120_v59, %s2177_s0 }
 0x349   : > { %v1126_v60 = vpop.permute.xlu1 %1125 }
 0x34a   : > { %v1137_v62 = vmul.f32 %v2064_v49, %v1126_v60 }
 0x34d   : > { %v1128_v61 = vpop.permute.xlu0 %1127  ;;  %v1130_v0 = vpop.permute.xlu1 %1129 }
 0x34e   : > { %v1138_v63 = vmul.f32 %v2068_v54, %v1128_v61  ;;  %v1139_v5 = vmul.f32 %v2062_v47, %v1130_v0 }
 0x350   : > { %v1141_v2 = vpack.c.bf16 %v1138_v63, %v1137_v62 }
 0x351   : > { %v1132_v4 = vpop.permute.xlu0 %1131 }
 0x352   : > { %v1140_v7 = vmul.f32 %v2066_v51, %v1132_v4  ;;  %1916 = vmatprep.mubr.msk.bf16.mxu0 %vm793_vm3, %v1141_v2 }
 0x354   : > { %v1142_v8 = vpack.c.bf16 %v1140_v7, %v1139_v5 }
 0x356   : > { %1917 = vmatmul.mubr.msk.bf16.vlgmr.msra.gmra.mxu0 %vm793_vm3, %v1142_v8 }
 0x357   : > { %1921 = vmatpush3.bf16.msra.mxu0 %v2050_v9  ;;  %v1301_v9 = vsub.s32 1, %v2329_v1  ;;  %v2058_v1 = vld [vmem:[%s2749_s9] sm:$0xff]  }
 0x358   : > { %1922 = vmatprep.subr.bf16.mxu0 %v2051_v10 }
 0x35b   : > { %1923 = vmatpush3.bf16.msra.mxu0 %v2051_v10  ;;  %v1302_v10 = vrot.slane %v2555_v28, %v1301_v9 }
 0x35c   : > { %1924 = vmatprep.subr.bf16.mxu0 %v2052_v11 }
 0x35f   : > { %1925 = vmatpush3.bf16.msra.mxu0 %v2052_v11 }
 0x360   : > { %1926 = vmatprep.subr.bf16.mxu0 %v2053_v12 }
 0x363   : > { %1927 = vmatpush3.bf16.msra.mxu0 %v2053_v12 }
 0x364   : > { %1928 = vmatprep.subr.bf16.mxu0 %v2054_v13 }
 0x367   : > { %1929 = vmatpush3.bf16.msra.mxu0 %v2054_v13 }
 0x368   : > { %1930 = vmatprep.subr.bf16.mxu0 %v2055_v16 }
 0x36b   : > { %1931 = vmatpush3.bf16.msra.mxu0 %v2055_v16 }
 0x36c   : > { %1932 = vmatprep.subr.bf16.mxu0 %v2056_v24 }
 0x36f   : > { %1933 = vmatpush3.bf16.msra.mxu0 %v2056_v24 }
 0x416   : > { %v1918_v15 = vpop.f32.mrf.mxu0 }
 0x417   : > { %v2591_v17 = vadd.f32 %v1918_v15, %v1801_v14 }
 0x418   : > { %v1205_v18 = vpop.f32.mrf.mxu0 }
 0x419   : > { %v1222_v19 = vadd.f32 %v2591_v17, %v2471_v40  ;;  %v1206_v21 = vadd.f32 %v1801_v14, %v1205_v18 }
 0x41a   : > { %v1919_v22 = vpop.f32.mrf.mxu0 }
 0x41b   : > { %v1220_v25 = vadd.f32 %v1206_v21, %v2479_v44  ;;  %v1217_v26 = vadd.f32 %v1919_v22, %v1801_v14  ;;  %v1226_v27 = vmul.f32 %v1222_v19, %v2465_v36 }
 0x41c   : > { %v1208_v29 = vpop.f32.mrf.mxu0 }
 0x41d   : > { %v1224_v31 = vmul.f32 %v1220_v25, %v2463_v33  ;;  %v1223_v32 = vadd.f32 %v1217_v26, %v2485_v48  ;;  %v2602_v40 = vadd.f32 %v1801_v14, %v1208_v29  ;;  %v1232_v35 = vrot.slane %v1226_v27, 7 }
 0x41e   : > { %v1248_v37 = vrot.slane %v1226_v27, 1 }
 0x41f   : > { %v1227_v34 = vmul.f32 %v1223_v32, %v2473_v42  ;;  %v1230_v38 = vrot.slane %v1224_v31, 7  ;;  %v1221_v44 = vadd.f32 %v2602_v40, %v2491_v6  ;;  %v1246_v39 = vrot.slane %v1224_v31, 1 }
 0x421   : > { %v1233_v41 = vrot.slane %v1227_v34, 7  ;;  %v1249_v45 = vrot.slane %v1227_v34, 1  ;;  %v1245_v46 = vpack.c.bf16 %v1227_v34, %v1226_v27  ;;  %v1225_v47 = vmul.f32 %v1221_v44, %v2454_v30 }
 0x423   : > { %1264 = vrot.lane.b32.xlu0 %v1245_v46, %s2175_s16  ;;  %v1250_v33 = vsel %vm918_vm4, %v1248_v37, %v1249_v45  ;;  %v1253_v42 = vsel %vm918_vm4, %v1249_v45, %v1246_v39  ;;  %v1234_v48 = vsel %vm877_vm7, %v1232_v35, %v1233_v41  ;;  %v1237_v6 = vsel %vm877_vm7, %v1233_v41, %v1230_v38 }
 0x424   : > { %v1231_v49 = vrot.slane %v1225_v47, 7  ;;  %v1247_v50 = vrot.slane %v1225_v47, 1  ;;  %v1244_v51 = vpack.c.bf16 %v1225_v47, %v1224_v31  ;;  %v1257_v52 = vsel %vm934_vm5, %v1253_v42, 0.0 }
 0x425   : > { %v1259_v53 = vpack.c.bf16 %v1257_v52, %v1250_v33  ;;  %v1238_v54 = vsel %vm886_vm6, %v1237_v6, 0.0  ;;  %v2060_v52 = vld [vmem:[%s2751_s11] sm:$0xff]  }
 0x426   : > { %1262 = vrot.lane.b32.xlu1 %v1244_v51, %s2175_s16  ;;  %v1251_v55 = vsel %vm918_vm4, %v1247_v50, %v1248_v37  ;;  %v1252_v56 = vsel %vm918_vm4, %v1246_v39, %v1247_v50  ;;  %v1235_v57 = vsel %vm877_vm7, %v1231_v49, %v1232_v35  ;;  %v1236_v58 = vsel %vm877_vm7, %v1230_v38, %v1231_v49  ;;  %v2059_v49 = vld [vmem:[%s2751_s11 + $0x8] sm:$0xff]  }
 0x427   : > { %1270 = vrot.lane.b32.xlu0 %v1259_v53, %s2176_s17  ;;  %v1258_v43 = vpack.c.bf16 %v1251_v55, %v1252_v56  ;;  %v1243_v59 = vpack.c.bf16 %v1234_v48, %v1235_v57  ;;  %v1242_v3 = vpack.c.bf16 %v1236_v58, %v1238_v54  ;;  %v2178_v50 = vmov 0.0   ;;  %v1833_v53 = vld [vmem:[%s2750_s10] ss:$0 sm:$0xff] }
 0x42a   : > { %1268 = vrot.lane.b32.xlu1 %v1258_v43, %s2176_s17 }
 0x495   : > { %v1265_v60 = vpop.permute.xlu0 %1264 }
 0x496   : > { %v1277_v63 = vsel %vm793_vm3, %v1243_v59, %v1265_v60 }
 0x498   : > { %v1263_v61 = vpop.permute.xlu1 %1262 }
 0x499   : > { %v1271_v62 = vpop.permute.xlu0 %1270  ;;  %v1274_v0 = vsel %vm793_vm3, %v1242_v3, %v1263_v61 }
 0x49a   : > { %v1281_v2 = vsel %vm985_vm8, %v1277_v63, %v1271_v62 }
 0x49b   : > { %v1283_v8 = vsel %vm990_vm9, %v1281_v2, %v2538_v20  ;;  %v2057_v20 = vld [vmem:[%s2749_s9 + $0x8] sm:$0xff]  }
 0x49c   : > { %v1269_v4 = vpop.permute.xlu1 %1268  ;;  %1938 = vmatprep.subr.bf16.mxu1 %v2057_v20 }
 0x49d   : > { %v1279_v5 = vsel %vm985_vm8, %v1274_v0, %v1269_v4  ;;  %1939 = vmatpush3.bf16.msra.mxu1 %v2057_v20 }
 0x49e   : > { %v1282_v7 = vsel %vm990_vm9, %v1279_v5, %v2542_v23  ;;  %1940 = vmatprep.subr.bf16.mxu1 %v2058_v1 }
 0x49f   : > { %1934 = vmatprep.mubr.msk.bf16.mxu0 %vm1055_vm10, %v1282_v7 }
 0x4a0   : > { %1935 = vmatmul.mubr.msk.bf16.vlgmr.msra.gmra.mxu0 %vm1055_vm10, %v1283_v8 }
 0x4a1   : > { %1941 = vmatpush3.bf16.msra.mxu1 %v2058_v1 }
 0x4a2   : > { %1946 = vmatprep.subr.bf16.mxu1 %v2178_v50 }
 0x560   : > { %v1936_v11 = vpop.f32.mrf.mxu0 }
 0x561   : > { %v1392_v12 = vadd.f32 %v1936_v11, %v1302_v10 }
 0x562   : > { %v1383_v13 = vpop.f32.mrf.mxu0 }
 0x563   : > { %v1384_v14 = vadd.f32 %v1383_v13, %v1302_v10  ;;  %2069 = vtanh.f32 %v1392_v12 }
 0x564   : > { %v1937_v15 = vpop.f32.mrf.mxu0 }
 0x565   : > { %2071 = vtanh.f32 %v1384_v14  ;;  %v1395_v16 = vadd.f32 %v1937_v15, %v1302_v10 }
 0x566   : > { %v1386_v23 = vpop.f32.mrf.mxu0 }
 0x567   : > { %v1387_v18 = vadd.f32 %v1386_v23, %v1302_v10  ;;  %2073 = vtanh.f32 %v1395_v16 }
 0x569   : > { %2075 = vtanh.f32 %v1387_v18 }
 0x570   : > { %v2070_v28 = vpop.eup %2069 }
 0x571   : > { %v1404_v25 = vmul.f32 0.5, %v2070_v28 }
 0x572   : > { %v2072_v19 = vpop.eup %2071 }
 0x573   : > { %v1402_v21 = vmul.f32 0.5, %v2072_v19  ;;  %v1408_v31 = vadd.f32 0.5, %v1404_v25 }
 0x574   : > { %v2074_v22 = vpop.eup %2073 }
 0x575   : > { %v1406_v24 = vadd.f32 0.5, %v1402_v21  ;;  %v1405_v32 = vmul.f32 0.5, %v2074_v22 }
 0x576   : > { %v2076_v26 = vpop.eup %2075 }
 0x577   : > { %1414 = vrot.lane.b32.xlu1 %v1406_v24, %s2177_s0  ;;  %v1403_v27 = vmul.f32 0.5, %v2076_v26  ;;  %v1409_v34 = vadd.f32 0.5, %v1405_v32 }
 0x579   : > { %v1407_v29 = vadd.f32 0.5, %v1403_v27 }
 0x57b   : > { %1416 = vrot.lane.b32.xlu0 %v1407_v29, %s2177_s0  ;;  %1418 = vrot.lane.b32.xlu1 %v1408_v31, %s2177_s0 }
 0x57f   : > { %1420 = vrot.lane.b32.xlu0 %v1409_v34, %s2177_s0 }
 0x5e9   : > { %v1415_v35 = vpop.permute.xlu1 %1414 }
 0x5ea   : > { %v1426_v38 = vmul.f32 %v2072_v19, %v1415_v35 }
 0x5ed   : > { %v1417_v37 = vpop.permute.xlu0 %1416  ;;  %v1419_v39 = vpop.permute.xlu1 %1418 }
 0x5ee   : > { %v1427_v44 = vmul.f32 %v2076_v26, %v1417_v37  ;;  %v1428_v46 = vmul.f32 %v2070_v28, %v1419_v39 }
 0x5f0   : > { %v1430_v41 = vpack.c.bf16 %v1427_v44, %v1426_v38 }
 0x5f1   : > { %v1421_v45 = vpop.permute.xlu0 %1420 }
 0x5f2   : > { %v1429_v47 = vmul.f32 %v2074_v22, %v1421_v45  ;;  %1942 = vmatprep.mubr.msk.bf16.mxu1 %vm793_vm3, %v1430_v41 }
 0x5f4   : > { %v1431_v33 = vpack.c.bf16 %v1429_v47, %v1428_v46 }
 0x5f6   : > { %1943 = vmatmul.mubr.msk.bf16.vlgmr.msra.gmra.mxu1 %vm793_vm3, %v1431_v33 }
 0x5f7   : > { %1950 = vmatprep.mubr.msk.bf16.mxu1 %vm2179_vm12, %v2178_v50  ;;  %1947 = vmatpush3.bf16.msra.mxu1 %v2059_v49 }
 0x5f8   : > { %1948 = vmatprep.subr.bf16.mxu1 %v2178_v50 }
 0x5fb   : > { %1949 = vmatpush3.bf16.msra.mxu1 %v2060_v52 }
 0x6b6   : > { %v1944_v42 = vpop.f32.mrf.mxu1 }
 0x6b7   : > { %1505 = vrot.lane.b32.xlu0 %v1944_v42, %s2175_s16 }
 0x6b8   : > { %v1488_v48 = vpop.f32.mrf.mxu1 }
 0x6ba   : > { %v1945_v6 = vpop.f32.mrf.mxu1 }
 0x6bc   : > { %v1490_v51 = vpop.f32.mrf.mxu1 }
 0x6bd   : > { %1503 = vrot.lane.b32.xlu1 %v1490_v51, %s2175_s16 }
 0x6c1   : > { %1517 = vrot.lane.b32.xlu1 %v1833_v53, %s2175_s16  ;;  %s516_s16 = sand.u32 1, %s2145_s26  }
 0x6c2   : > { %s1762_s4 = sshll.u32 %s516_s16, 3  ;;  %s2687_s18 = scalar_lea.sflag [#allocation3], %s516_s16 }
 0x6c3   : > { %s518_s24 = scalar_lea.vmem [#allocation2], %s1762_s4 }
 0x6c4   : > { %s1621_s14 = sshll.u32 %s518_s24, 4  ;;  %s2680_s14 = int_to_ptr.vmem [resolvable:$true] %s1621_s14 }
 0x6c5   : > { %s2077_s4 = scalar_lea.vmem %s2680_s14, 128  ;;  %p2084_p4 = scmp.lt.s32.totalorder %s2680_s14, %s2082_s23 }
 0x6c6   : > { %p2078_p0 = scmp.ne.s32.totalorder %s2680_s14, %s2077_s4  ;;  %p2085_p5 = scmp.lt.s32.totalorder %s2083_s19, %s2077_s4 }
 0x6c8   : > { %p2079_p1 = pnand %p2078_p0, %p2303_p3  ;;  %p2086_p6 = por %p2085_p5, %p2084_p4 }
 0x6ca   : > { %p2080_p2 = pneg %p2079_p1 }
 0x6cc   : > { %p2087_p7 = pnand %p2086_p6, %p2080_p2 }
 0x729   : > { %v1506_v54 = vpop.permute.xlu0 %1505 }
 0x72a   : > { %v1510_v56 = vadd.f32 %v1506_v54, %v2591_v17 }
 0x72f   : > { %v1504_v55 = vpop.permute.xlu1 %1503 }
 0x730   : > { %v1509_v57 = vadd.f32 %v1504_v55, %v2602_v40  ;;  %v1834_v40 = vld [vmem:[%s2752_s12] ss:$0 sm:$0xff] }
 0x733   : > { %v1518_v58 = vpop.permute.xlu1 %1517 }
 0x734   : > { %v1520_v43 = vadd.f32 %v1518_v58, %v1509_v57  ;;  %v1521_v59 = vadd.f32 %v1518_v58, %v1510_v56 }
 0x736   : > { %v1522_v3 = vmul.f32 %v1520_v43, %v2454_v30  ;;  %v1523_v60 = vmul.f32 %v1521_v59, %v2465_v36 }
 0x738   : > { %v1524_v61 = vpack.c.bf16 %v1523_v60, %v1522_v3 }
 0x73a   : > { %1537 = vrot.lane.b32.xlu0 %v1524_v61, %s2177_s0  ;;  %s2685_s0 = scalar_lea.hbm %s2753_s13, %s1843_s20 }
 0x7ac   : > { %v1538_v62 = vpop.permute.xlu0 %1537 }
 0x7ad   : > { %1951 = vmatmul.mubr.msk.bf16.vlgmr.msra.gmra.mxu1 %vm793_vm3, %v1538_v62 }
 0x86d   : > { %v1588_v17 = vpop.f32.mrf.mxu1 }
 0x86e   : > { %v1589_v63 = vadd.f32 %v1834_v40, %v1588_v17 }
 0x86f   : > { %v1952_v30 = vpop.f32.mrf.mxu1 }
 0x871   : > { %v1591_v36 = vpop.f32.mrf.mxu1 }
 0x872   : > { %v1592_v0 = vadd.f32 %v1834_v40, %v1591_v36 }
 0x873   : > { %v1953_v2 = vpop.f32.mrf.mxu1 }
 0x874   : > { %v1851_v4 = vpack.c.bf16 %v1592_v0, %v1589_v63 }
 0x876   : > { %1852 = vst [vmem:[%s518_s24] sm:$0xff] %v1851_v4  }
 0x877   : > { %2090 = shalt.err (!%p2087_p7)
}
 0x878   : > { %s2091_s16 = scalar_lea.hbm %s2685_s0, 128  ;;  %s2095_s20 = scalar_lea.hbm %s2753_s13, 512 }
 0x879   : > { %p2092_p9 = scmp.ne.s32.totalorder %s2685_s0, %s2091_s16  ;;  %p2096_p12 = scmp.lt.s32.totalorder %s2685_s0, %s2753_s13 }
 0x87a   : > { %p2097_p13 = scmp.lt.s32.totalorder %s2095_s20, %s2091_s16 }
 0x87b   : > { %p2093_p10 = pnand %p2092_p9, %p2303_p3 }
 0x87c   : > { %p2098_p0 = por %p2097_p13, %p2096_p12 }
 0x87d   : > { %p2094_p11 = pneg %p2093_p10 }
 0x87f   : > { %p2099_p1 = pnand %p2098_p0, %p2094_p11 }
 0x881   : > { %2102 = shalt.err (!%p2099_p1)
}
 0x882   : > { %s2181_s4 = smov 4  }
 0x883   : > { %1954 = dma.vmem_to_hbm [thread:$0]  (%p2303_p3), %s2680_s14, 128, %s2685_s0, %s2687_s18, %s2176_s17, %s2176_s17, %s2181_s4  }
 0x884 PF: > { %p1960_p2 = scmp.ge.s32.totalorder %s2169_s15, 2  ;;  %s1636_s30 = sand.u32 1, %s2141_s25  }
 0x885   : > { %s1637_s23 = scalar_lea.sflag [#allocation3], %s1636_s30 }
 0x886   : > { %p1957_p4 = pnand %p1960_p2, %p2312_p8 }
 0x888   : > { %p1958_p5 = pneg %p1957_p4 }
 0x88a   : > { %2136 = dma.done.wait (%p1958_p5), %s1637_s23, 128  }
 0x88b   : > { %2138 = vsyncadd (%p1958_p5), %s1637_s23, 4294967168  ;;  %s26_s15 = sadd.s32 1, %s2169_s15   ;;  %s2777_s21 = sld [smem:[#allocation9_spill]] }
 0x88c   : > { %p23_p6 = scmp.ge.s32.totalorder %s26_s15, 6   ;;  %s2778_s28 = sld [smem:[#allocation5_spill]] }
 0x88d   : > { %s2779_s29 = sld [smem:[#allocation6_spill]]  ;;  %s2782_s25 = smov %s2145_s26 }
 0x88e   : > { %s2780_s30 = sld [smem:[#allocation7_spill]]  ;;  %s2783_s26 = smov %s2149_s27 }
 0x88f   : > { %s2781_s14 = sld [smem:[#allocation8_spill]]  ;;  %25 = sbr.rel (!%p23_p6) target bundleno = 9 (0x9), region = 117 }
 0x891   : > { %s2784_s27 = smov %s2777_s21 }
 0x894   :  { %1642 = vsyncpa [#allocation3], 1 }
 0x895   :  { %1644 = vsyncpa [#allocation3 + $0x1], 1 }

</bundles_post_ra>
